<compile_context>
chip_gen: v7x
topology: tpu7x:2x2x1
jax: 0.10.0
libtpu: 0.0.40
codegen_flags: <defaults>
</compile_context>

<pallas_src>
import numpy as np
import jax
import jax.numpy as jnp
from jax import lax
from jax.experimental import pallas as pl
from jax.experimental.pallas import tpu as pltpu

PRIOR_PI = 0.5
PRIOR_SIGMA1 = float(np.exp(-1.0))
PRIOR_SIGMA2 = float(np.exp(-5.0))
LOG_SQRT_2PI = float(np.log(np.sqrt(2.0 * np.pi)))

# Folded compile-time constants for the scale-mixture prior.
# (Assumes sigma1 >= sigma2, true for the module defaults, so the
#  log-sum-exp pivot on the sigma1 branch is bounded: exp(_DC - ...) <= e^4.)
_C1 = float(-np.log(PRIOR_SIGMA1) - LOG_SQRT_2PI)
_INV1SQ = float(1.0 / PRIOR_SIGMA1 ** 2)
_INV2SQ = float(1.0 / PRIOR_SIGMA2 ** 2)
_DC = float(np.log(PRIOR_SIGMA1 / PRIOR_SIGMA2))
_AHALF = float(0.5 * (_INV2SQ - _INV1SQ))


def _softplus(x):
    # Numerically stable softplus (beta=1): max(x,0) + log1p(exp(-|x|)).
    return jnp.maximum(x, 0.0) + jnp.log1p(jnp.exp(-jnp.abs(x)))


def _mixture_logp(v):
    # log( pi*N(v;0,s1) + (1-pi)*N(v;0,s2) ), log-sum-exp form: 1 exp + 1 log.
    v2 = v * v
    a = _C1 - 0.5 * _INV1SQ * v2
    return a + jnp.log(PRIOR_PI + (1.0 - PRIOR_PI) * jnp.exp(_DC - _AHALF * v2))


def _make_kernel(n_out, block_n, training, use_bf16_matmul):
    def kernel(x_ref, wmu_ref, wrho_ref, weps_ref, bmu_ref, brho_ref, beps_ref,
               *out_refs):
        out_ref = out_refs[0]

        # --- reparameterized sample of weights / bias ---
        w_rho = wrho_ref[...]                       # (n_in, block_n), pre-transposed
        b_rho = brho_ref[...]                       # (1, block_n)
        w_sigma = _softplus(w_rho)
        b_sigma = _softplus(b_rho)
        w_eps = weps_ref[...]
        b_eps = beps_ref[...]
        w = wmu_ref[...] + w_eps * w_sigma          # (n_in, block_n)
        b = bmu_ref[...] + b_eps * b_sigma          # (1, block_n)

        # --- F.linear hot path: (B, n_in) @ (n_in, block_n) + b, MXU-native ---
        xv = x_ref[...]
        if use_bf16_matmul:
            acc = jnp.dot(xv.astype(jnp.bfloat16), w.astype(jnp.bfloat16),
                          preferred_element_type=jnp.float32)
        else:
            acc = jnp.dot(xv, w, preferred_element_type=jnp.float32)
        out_ref[...] = (acc + b).astype(out_ref.dtype)

        if not training:
            return

        lp_ref, lq_ref = out_refs[1], out_refs[2]

        # Mask away columns that only exist because of n_out padding.
        col = (pl.program_id(0) * block_n
               + lax.broadcasted_iota(jnp.int32, (1, block_n), 1))
        valid = (col < n_out).astype(jnp.float32)   # (1, block_n)

        # --- ScaleMixture.log_P(w) + log_P(b): per-tile lane partial sums ---
        prior = jnp.sum(_mixture_logp(w), axis=0, keepdims=True) + _mixture_logp(b)
        lp_ref[...] = prior * valid

        # --- Gaussian log posterior: (w - mu)/sigma == eps exactly, reuse eps ---
        post_w = jnp.sum(-LOG_SQRT_2PI - jnp.log(w_sigma) - 0.5 * w_eps * w_eps,
                         axis=0, keepdims=True)
        post_b = -LOG_SQRT_2PI - jnp.log(b_sigma) - 0.5 * b_eps * b_eps
        lq_ref[...] = (post_w + post_b) * valid

    return kernel


def _choose_block_n(n_in):
    # Keep the double-buffered {w_mu, w_rho, w_eps} tiles under ~8 MiB so the
    # kernel fits comfortably even in v7x's 64 MiB VMEM.
    budget = 8 * 1024 * 1024
    bn = budget // (3 * 2 * 4 * max(n_in, 1))
    bn = (bn // 128) * 128
    return int(max(128, min(512, bn)))


def bayesian_linear(x, w_mu, w_rho, w_eps, b_mu, b_rho, b_eps, *,
                    training=True, block_n=None, use_bf16_matmul=False):
    """BayesianLinear forward.

    training=True  -> (output, log_prior, log_posterior)
    training=False -> output only (prior/posterior work skipped entirely)
    """
    B, n_in = x.shape
    n_out = w_mu.shape[0]

    if block_n is None:
        block_n = _choose_block_n(n_in)
    n_out_pad = block_n * pl.cdiv(n_out, block_n)
    grid_n = n_out_pad // block_n
    pad = n_out_pad - n_out

    # Pre-transpose weights to (n_in, n_out) (MXU-preferred (M,K)x(K,N) feed)
    # and lay bias-shaped params out as lane-dense (1, n_out) rows.  Pad the
    # n_out axis to a multiple of the lane-dense tile; padded columns are
    # masked out of the reductions and sliced off the output.
    def prep_w(a):
        a = a.T
        return jnp.pad(a, ((0, 0), (0, pad))) if pad else a

    def prep_b(a):
        a = a.reshape(1, n_out)
        return jnp.pad(a, ((0, 0), (0, pad))) if pad else a

    wmu_t, wrho_t, weps_t = prep_w(w_mu), prep_w(w_rho), prep_w(w_eps)
    bmu_r, brho_r, beps_r = prep_b(b_mu), prep_b(b_rho), prep_b(b_eps)

    w_spec = pl.BlockSpec((n_in, block_n), lambda j: (0, j))
    b_spec = pl.BlockSpec((1, block_n), lambda j: (0, j))
    in_specs = [
        pl.BlockSpec((B, n_in), lambda j: (0, 0)),   # x reused by every tile
        w_spec, w_spec, w_spec,
        b_spec, b_spec, b_spec,
    ]

    out_shapes = [jax.ShapeDtypeStruct((B, n_out_pad), x.dtype)]
    out_specs = [pl.BlockSpec((B, block_n), lambda j: (0, j))]
    if training:
        # Per-tile lane partial sums (lane-dense, one row per grid step);
        # the final tiny reduction happens in the wrapper.
        out_shapes += [jax.ShapeDtypeStruct((grid_n, block_n), jnp.float32)] * 2
        out_specs += [pl.BlockSpec((1, block_n), lambda j: (j, 0))] * 2

    kernel = _make_kernel(n_out, block_n, training, use_bf16_matmul)

    results = pl.pallas_call(
        kernel,
        out_shape=tuple(out_shapes),
        grid_spec=pltpu.PrefetchScalarGridSpec(
            num_scalar_prefetch=0,
            grid=(grid_n,),
            in_specs=in_specs,
            out_specs=tuple(out_specs),
        ),
        compiler_params=pltpu.CompilerParams(
            dimension_semantics=("parallel",),        # megacore-shardable axis
            vmem_limit_bytes=48 * 1024 * 1024,        # headroom on v7x's 64 MiB
        ),
    )(x, wmu_t, wrho_t, weps_t, bmu_r, brho_r, beps_r)

    out = results[0][:, :n_out]
    if not training:
        return out
    log_prior = jnp.sum(results[1])
    log_post = jnp.sum(results[2])
    return out, log_prior, log_post


# --------------------------- pure-JAX reference ---------------------------

def _normal_logpdf(v, sigma):
    return -jnp.log(sigma) - LOG_SQRT_2PI - 0.5 * (v / sigma) ** 2


def _reference(x, w_mu, w_rho, w_eps, b_mu, b_rho, b_eps):
    w_sigma = _softplus(w_rho)
    b_sigma = _softplus(b_rho)
    w = w_mu + w_eps * w_sigma
    b = b_mu + b_eps * b_sigma
    out = x @ w.T + b

    def mix(v):
        p1 = jnp.exp(_normal_logpdf(v, PRIOR_SIGMA1))
        p2 = jnp.exp(_normal_logpdf(v, PRIOR_SIGMA2))
        return jnp.sum(jnp.log(PRIOR_PI * p1 + (1.0 - PRIOR_PI) * p2))

    log_prior = mix(w) + mix(b)
    logw = jnp.sum(-LOG_SQRT_2PI - jnp.log(w_sigma)
                   - 0.5 * ((w - w_mu) / w_sigma) ** 2)
    logb = jnp.sum(-LOG_SQRT_2PI - jnp.log(b_sigma)
                   - 0.5 * ((b - b_mu) / b_sigma) ** 2)
    return out, log_prior, logw + logb


if __name__ == "__main__":
    B, n_in, n_out = 8, 32, 16
    stddev = float(np.sqrt(2.0 / n_in))  # he_init=True

    key = jax.random.PRNGKey(0)
    kx, kwm, kwr, kbm, kbr, kwe, kbe = jax.random.split(key, 7)

    x = jax.random.normal(kx, (B, n_in), dtype=jnp.float32)
    # Deterministic parameter init matching the module's __init__ distributions.
    w_mu = stddev * jax.random.normal(kwm, (n_out, n_in), dtype=jnp.float32)
    w_rho = jax.random.uniform(kwr, (n_out, n_in), jnp.float32, -5.0, -4.0)
    b_mu = stddev * jax.random.normal(kbm, (n_out,), dtype=jnp.float32)
    b_rho = jax.random.uniform(kbr, (n_out,), jnp.float32, -5.0, -4.0)
    # Deterministic stand-in for the N(0,1) epsilon samples drawn each forward.
    w_eps = jax.random.normal(kwe, (n_out, n_in), dtype=jnp.float32)
    b_eps = jax.random.normal(kbe, (n_out,), dtype=jnp.float32)

    out, log_prior, log_post = bayesian_linear(
        x, w_mu, w_rho, w_eps, b_mu, b_rho, b_eps, training=True)
    out_eval = bayesian_linear(
        x, w_mu, w_rho, w_eps, b_mu, b_rho, b_eps, training=False)
    jax.block_until_ready((out, log_prior, log_post, out_eval))

    out_r, lp_r, lq_r = _reference(x, w_mu, w_rho, w_eps, b_mu, b_rho, b_eps)
    assert np.allclose(np.asarray(out), np.asarray(out_r), rtol=1e-5, atol=1e-5)
    assert np.allclose(np.asarray(out_eval), np.asarray(out_r), rtol=1e-5, atol=1e-5)
    assert np.allclose(float(log_prior), float(lp_r), rtol=1e-4, atol=1e-2)
    assert np.allclose(float(log_post), float(lq_r), rtol=1e-4, atol=1e-2)

    print("KERNEL_OK")
</pallas_src>

<mosaic_0001>
module attributes {stable_mosaic.version = 11 : i64} {
  func.func @kernel(%arg0: i32, %arg1: memref<8x32xf32, #tpu.memory_space<vmem>>, %arg2: memref<32x512xf32, #tpu.memory_space<vmem>>, %arg3: memref<32x512xf32, #tpu.memory_space<vmem>>, %arg4: memref<32x512xf32, #tpu.memory_space<vmem>>, %arg5: memref<1x512xf32, #tpu.memory_space<vmem>>, %arg6: memref<1x512xf32, #tpu.memory_space<vmem>>, %arg7: memref<1x512xf32, #tpu.memory_space<vmem>>, %arg8: memref<8x512xf32, #tpu.memory_space<vmem>>, %arg9: memref<1x512xf32, #tpu.memory_space<vmem>>, %arg10: memref<1x512xf32, #tpu.memory_space<vmem>>) attributes {dimension_semantics = [#tpu.dimension_semantics<parallel>], iteration_bounds = array<i64: 1>, scalar_prefetch = 0 : i64, scratch_operands = 0 : i64, tpu.core_type = #tpu.core_type<tc>, window_params = [{pipeline_mode = #tpu.pipeline_mode<synchronous>, transform_indices = @transform_0, window_bounds = array<i64: 8, 32>}, {transform_indices = @transform_1, window_bounds = array<i64: 32, 512>}, {transform_indices = @transform_2, window_bounds = array<i64: 32, 512>}, {transform_indices = @transform_3, window_bounds = array<i64: 32, 512>}, {transform_indices = @transform_4, window_bounds = array<i64: 1, 512>}, {transform_indices = @transform_5, window_bounds = array<i64: 1, 512>}, {transform_indices = @transform_6, window_bounds = array<i64: 1, 512>}, {transform_indices = @transform_7, window_bounds = array<i64: 8, 512>}, {transform_indices = @transform_8, window_bounds = array<i64: 1, 512>}, {transform_indices = @transform_9, window_bounds = array<i64: 1, 512>}]} {
    %c0 = arith.constant 0 : index
    %c0_0 = arith.constant 0 : index
    %0 = vector.load %arg3[%c0, %c0_0] : memref<32x512xf32, #tpu.memory_space<vmem>>, vector<32x512xf32>
    %c0_1 = arith.constant 0 : index
    %c0_2 = arith.constant 0 : index
    %1 = vector.load %arg6[%c0_1, %c0_2] : memref<1x512xf32, #tpu.memory_space<vmem>>, vector<1x512xf32>
    %cst = arith.constant 0.000000e+00 : f32
    %2 = vector.broadcast %cst : f32 to vector<32x512xf32>
    %3 = arith.maximumf %0, %2 : vector<32x512xf32>
    %4 = math.absf %0 : vector<32x512xf32>
    %cst_3 = arith.constant 0.000000e+00 : f32
    %5 = vector.broadcast %cst_3 : f32 to vector<32x512xf32>
    %6 = arith.subf %5, %4 : vector<32x512xf32>
    %7 = math.exp %6 : vector<32x512xf32>
    %8 = math.log1p %7 : vector<32x512xf32>
    %9 = arith.addf %3, %8 : vector<32x512xf32>
    %cst_4 = arith.constant 0.000000e+00 : f32
    %10 = vector.broadcast %cst_4 : f32 to vector<1x512xf32>
    %11 = arith.maximumf %1, %10 : vector<1x512xf32>
    %12 = math.absf %1 : vector<1x512xf32>
    %cst_5 = arith.constant 0.000000e+00 : f32
    %13 = vector.broadcast %cst_5 : f32 to vector<1x512xf32>
    %14 = arith.subf %13, %12 : vector<1x512xf32>
    %15 = math.exp %14 : vector<1x512xf32>
    %16 = math.log1p %15 : vector<1x512xf32>
    %17 = arith.addf %11, %16 : vector<1x512xf32>
    %c0_6 = arith.constant 0 : index
    %c0_7 = arith.constant 0 : index
    %18 = vector.load %arg4[%c0_6, %c0_7] : memref<32x512xf32, #tpu.memory_space<vmem>>, vector<32x512xf32>
    %c0_8 = arith.constant 0 : index
    %c0_9 = arith.constant 0 : index
    %19 = vector.load %arg7[%c0_8, %c0_9] : memref<1x512xf32, #tpu.memory_space<vmem>>, vector<1x512xf32>
    %c0_10 = arith.constant 0 : index
    %c0_11 = arith.constant 0 : index
    %20 = vector.load %arg2[%c0_10, %c0_11] : memref<32x512xf32, #tpu.memory_space<vmem>>, vector<32x512xf32>
    %21 = arith.mulf %18, %9 : vector<32x512xf32>
    %22 = arith.addf %20, %21 : vector<32x512xf32>
    %c0_12 = arith.constant 0 : index
    %c0_13 = arith.constant 0 : index
    %23 = vector.load %arg5[%c0_12, %c0_13] : memref<1x512xf32, #tpu.memory_space<vmem>>, vector<1x512xf32>
    %24 = arith.mulf %19, %17 : vector<1x512xf32>
    %25 = arith.addf %23, %24 : vector<1x512xf32>
    %c0_14 = arith.constant 0 : index
    %c0_15 = arith.constant 0 : index
    %26 = vector.load %arg1[%c0_14, %c0_15] : memref<8x32xf32, #tpu.memory_space<vmem>>, vector<8x32xf32>
    %cst_16 = arith.constant dense<0.000000e+00> : vector<8x512xf32>
    %27 = tpu.matmul %26, %22, %cst_16 {dimension_numbers = #tpu.dot_dimension_numbers<[1], [0], [0], [1], [0, 0, 1, 1], [], []>} : vector<8x32xf32>, vector<32x512xf32>, vector<8x512xf32> -> vector<8x512xf32>
    %28 = vector.broadcast %25 : vector<1x512xf32> to vector<8x512xf32>
    %29 = arith.addf %27, %28 : vector<8x512xf32>
    %c0_17 = arith.constant 0 : index
    %c0_18 = arith.constant 0 : index
    %30 = vector.load %arg8[%c0_17, %c0_18] : memref<8x512xf32, #tpu.memory_space<vmem>>, vector<8x512xf32>
    tpu.vector_store %arg8[%c0_17, %c0_18], %29 {strides = array<i32>} : memref<8x512xf32, #tpu.memory_space<vmem>>, vector<8x512xf32>,
    %c512_i32 = arith.constant 512 : i32
    %31 = arith.muli %arg0, %c512_i32 : i32
    %32 = tpu.iota {dimensions = array<i32: 1>} : vector<1x512xi32>
    %33 = vector.broadcast %31 : i32 to vector<1x512xi32>
    %34 = arith.addi %33, %32 : vector<1x512xi32>
    %c16_i32 = arith.constant 16 : i32
    %35 = vector.broadcast %c16_i32 : i32 to vector<1x512xi32>
    %36 = arith.cmpi slt, %34, %35 : vector<1x512xi32>
    %37 = arith.extui %36 : vector<1x512xi1> to vector<1x512xi32>
    %38 = arith.sitofp %37 : vector<1x512xi32> to vector<1x512xf32>
    %39 = arith.mulf %22, %22 : vector<32x512xf32>
    %cst_19 = arith.constant 3.6945281 : f32
    %40 = vector.broadcast %cst_19 : f32 to vector<32x512xf32>
    %41 = arith.mulf %40, %39 : vector<32x512xf32>
    %cst_20 = arith.constant 0.0810614675 : f32
    %42 = vector.broadcast %cst_20 : f32 to vector<32x512xf32>
    %43 = arith.subf %42, %41 : vector<32x512xf32>
    %cst_21 = arith.constant 11009.5381 : f32
    %44 = vector.broadcast %cst_21 : f32 to vector<32x512xf32>
    %45 = arith.mulf %44, %39 : vector<32x512xf32>
    %cst_22 = arith.constant 4.000000e+00 : f32
    %46 = vector.broadcast %cst_22 : f32 to vector<32x512xf32>
    %47 = arith.subf %46, %45 : vector<32x512xf32>
    %48 = math.exp %47 : vector<32x512xf32>
    %cst_23 = arith.constant 5.000000e-01 : f32
    %49 = vector.broadcast %cst_23 : f32 to vector<32x512xf32>
    %50 = arith.mulf %49, %48 : vector<32x512xf32>
    %cst_24 = arith.constant 5.000000e-01 : f32
    %51 = vector.broadcast %cst_24 : f32 to vector<32x512xf32>
    %52 = arith.addf %51, %50 : vector<32x512xf32>
    %53 = math.log %52 : vector<32x512xf32>
    %54 = arith.addf %43, %53 : vector<32x512xf32>
    %cst_25 = arith.constant dense<0.000000e+00> : vector<512xf32>
    %55 = vector.multi_reduction <add>, %54, %cst_25 [0] : vector<32x512xf32> to vector<512xf32>
    %56 = vector.shape_cast %55 : vector<512xf32> to vector<1x512xf32>
    %57 = arith.mulf %25, %25 : vector<1x512xf32>
    %cst_26 = arith.constant 3.6945281 : f32
    %58 = vector.broadcast %cst_26 : f32 to vector<1x512xf32>
    %59 = arith.mulf %58, %57 : vector<1x512xf32>
    %cst_27 = arith.constant 0.0810614675 : f32
    %60 = vector.broadcast %cst_27 : f32 to vector<1x512xf32>
    %61 = arith.subf %60, %59 : vector<1x512xf32>
    %cst_28 = arith.constant 11009.5381 : f32
    %62 = vector.broadcast %cst_28 : f32 to vector<1x512xf32>
    %63 = arith.mulf %62, %57 : vector<1x512xf32>
    %cst_29 = arith.constant 4.000000e+00 : f32
    %64 = vector.broadcast %cst_29 : f32 to vector<1x512xf32>
    %65 = arith.subf %64, %63 : vector<1x512xf32>
    %66 = math.exp %65 : vector<1x512xf32>
    %cst_30 = arith.constant 5.000000e-01 : f32
    %67 = vector.broadcast %cst_30 : f32 to vector<1x512xf32>
    %68 = arith.mulf %67, %66 : vector<1x512xf32>
    %cst_31 = arith.constant 5.000000e-01 : f32
    %69 = vector.broadcast %cst_31 : f32 to vector<1x512xf32>
    %70 = arith.addf %69, %68 : vector<1x512xf32>
    %71 = math.log %70 : vector<1x512xf32>
    %72 = arith.addf %61, %71 : vector<1x512xf32>
    %73 = arith.addf %56, %72 : vector<1x512xf32>
    %74 = arith.mulf %73, %38 : vector<1x512xf32>
    %c0_32 = arith.constant 0 : index
    %c0_33 = arith.constant 0 : index
    %75 = vector.load %arg9[%c0_32, %c0_33] : memref<1x512xf32, #tpu.memory_space<vmem>>, vector<1x512xf32>
    tpu.vector_store %arg9[%c0_32, %c0_33], %74 {strides = array<i32>} : memref<1x512xf32, #tpu.memory_space<vmem>>, vector<1x512xf32>,
    %76 = math.log %9 : vector<32x512xf32>
    %cst_34 = arith.constant -0.918938517 : f32
    %77 = vector.broadcast %cst_34 : f32 to vector<32x512xf32>
    %78 = arith.subf %77, %76 : vector<32x512xf32>
    %cst_35 = arith.constant 5.000000e-01 : f32
    %79 = vector.broadcast %cst_35 : f32 to vector<32x512xf32>
    %80 = arith.mulf %79, %18 : vector<32x512xf32>
    %81 = arith.mulf %80, %18 : vector<32x512xf32>
    %82 = arith.subf %78, %81 : vector<32x512xf32>
    %cst_36 = arith.constant dense<0.000000e+00> : vector<512xf32>
    %83 = vector.multi_reduction <add>, %82, %cst_36 [0] : vector<32x512xf32> to vector<512xf32>
    %84 = vector.shape_cast %83 : vector<512xf32> to vector<1x512xf32>
    %85 = math.log %17 : vector<1x512xf32>
    %cst_37 = arith.constant -0.918938517 : f32
    %86 = vector.broadcast %cst_37 : f32 to vector<1x512xf32>
    %87 = arith.subf %86, %85 : vector<1x512xf32>
    %cst_38 = arith.constant 5.000000e-01 : f32
    %88 = vector.broadcast %cst_38 : f32 to vector<1x512xf32>
    %89 = arith.mulf %88, %19 : vector<1x512xf32>
    %90 = arith.mulf %89, %19 : vector<1x512xf32>
    %91 = arith.subf %87, %90 : vector<1x512xf32>
    %92 = arith.addf %84, %91 : vector<1x512xf32>
    %93 = arith.mulf %92, %38 : vector<1x512xf32>
    %c0_39 = arith.constant 0 : index
    %c0_40 = arith.constant 0 : index
    %94 = vector.load %arg10[%c0_39, %c0_40] : memref<1x512xf32, #tpu.memory_space<vmem>>, vector<1x512xf32>
    tpu.vector_store %arg10[%c0_39, %c0_40], %93 {strides = array<i32>} : memref<1x512xf32, #tpu.memory_space<vmem>>, vector<1x512xf32>,
    return
  }
  func.func @transform_0(%arg0: i32) -> (i32, i32) {
    %c0_i32 = arith.constant 0 : i32
    %c0_i32_0 = arith.constant 0 : i32
    %c0_i32_1 = arith.constant 0 : i32
    return %c0_i32, %c0_i32_0 : i32, i32
  }
  func.func @transform_1(%arg0: i32) -> (i32, i32) {
    %c0_i32 = arith.constant 0 : i32
    %c0_i32_0 = arith.constant 0 : i32
    return %c0_i32, %arg0 : i32, i32
  }
  func.func @transform_2(%arg0: i32) -> (i32, i32) {
    %c0_i32 = arith.constant 0 : i32
    %c0_i32_0 = arith.constant 0 : i32
    return %c0_i32, %arg0 : i32, i32
  }
  func.func @transform_3(%arg0: i32) -> (i32, i32) {
    %c0_i32 = arith.constant 0 : i32
    %c0_i32_0 = arith.constant 0 : i32
    return %c0_i32, %arg0 : i32, i32
  }
  func.func @transform_4(%arg0: i32) -> (i32, i32) {
    %c0_i32 = arith.constant 0 : i32
    %c0_i32_0 = arith.constant 0 : i32
    return %c0_i32, %arg0 : i32, i32
  }
  func.func @transform_5(%arg0: i32) -> (i32, i32) {
    %c0_i32 = arith.constant 0 : i32
    %c0_i32_0 = arith.constant 0 : i32
    return %c0_i32, %arg0 : i32, i32
  }
  func.func @transform_6(%arg0: i32) -> (i32, i32) {
    %c0_i32 = arith.constant 0 : i32
    %c0_i32_0 = arith.constant 0 : i32
    return %c0_i32, %arg0 : i32, i32
  }
  func.func @transform_7(%arg0: i32) -> (i32, i32) {
    %c0_i32 = arith.constant 0 : i32
    %c0_i32_0 = arith.constant 0 : i32
    return %c0_i32, %arg0 : i32, i32
  }
  func.func @transform_8(%arg0: i32) -> (i32, i32) {
    %c0_i32 = arith.constant 0 : i32
    %c0_i32_0 = arith.constant 0 : i32
    return %arg0, %c0_i32 : i32, i32
  }
  func.func @transform_9(%arg0: i32) -> (i32, i32) {
    %c0_i32 = arith.constant 0 : i32
    %c0_i32_0 = arith.constant 0 : i32
    return %arg0, %c0_i32 : i32, i32
  }
}

</mosaic_0001>

<bundles_post_ra>
// kernel: tpu_custom_call.1
= control target key start
LH: loop header
LB: loop body
LE: loop exit
PB: predicated region body
PF: predicated region fallthrough
CT: control target
= control target key end

     0   :  { %15 = vsyncpa [#allocation3], 0  ;;  %s2242_s0 = inlined_call_operand.hbm [shape: f32[8,32], index: 0, kind: input, shape index: {}]   ;;  %s2243_s1 = inlined_call_operand.hbm [shape: f32[32,512], index: 1, kind: input, shape index: {}]   ;;  %s2244_s2 = inlined_call_operand.hbm [shape: f32[32,512], index: 2, kind: input, shape index: {}]   ;;  %s2245_s3 = inlined_call_operand.hbm [shape: f32[32,512], index: 3, kind: input, shape index: {}]   ;;  %s2246_s4 = inlined_call_operand.vmem [shape: f32[1,512], index: 4, kind: input, shape index: {}]   ;;  %s2247_s5 = inlined_call_operand.vmem [shape: f32[1,512], index: 5, kind: input, shape index: {}]   ;;  %s2248_s6 = inlined_call_operand.vmem [shape: f32[1,512], index: 6, kind: input, shape index: {}]   ;;  %s2249_s7 = inlined_call_operand.hbm [shape: f32[8,512], index: 7, kind: output, shape index: {0}]   ;;  %s2250_s8 = inlined_call_operand.hbm [shape: f32[1,512], index: 8, kind: output, shape index: {1}]   ;;  %s2251_s9 = inlined_call_operand.hbm [shape: f32[1,512], index: 9, kind: output, shape index: {2}]  }
   0x1   :  { %16 = vsyncpa [#allocation6], 0 }
   0x2   :  { %17 = vsyncpa [#allocation9], 0 }
   0x3   :  { %18 = vsyncpa [#allocation4], 0 }
   0x4   :  { %19 = vsyncpa [#allocation12], 0  ;;  %s1527_s30 = smov [#allocation5]   ;;  %s1363_s13 = scalar_lea.hbm %s2243_s1, 2048 }
   0x5   :  { %s35_s10 = sshll.u32 %s1527_s30, 4  ;;  %p1364_p0 = scmp.ne.s32.totalorder %s2243_s1, %s1363_s13  ;;  %s36_s10 = int_to_ptr.vmem [resolvable:$true] %s35_s10 }
   0x6   :  { %p1367_p1 = scmp.lt.u32.totalorder %s1363_s13, %s2243_s1 }
   0x8   :  { %p1369_p2 = pnand %p1367_p1, %p1364_p0 }
   0xa   :  { %1372 = shalt.err (!%p1369_p2)
}
   0xb   :  { %s1373_s18 = scalar_lea.vmem %s36_s10, 2048  ;;  %p1378_p4 = scmp.lt.s32.totalorder %s36_s10, %s36_s10 }
   0xc   :  { %p1374_p3 = scmp.ne.s32.totalorder %s36_s10, %s1373_s18  ;;  %p1379_p5 = scmp.lt.s32.totalorder %s1373_s18, %s1373_s18 }
   0xe   :  { %p1380_p6 = por %p1379_p5, %p1378_p4 }
  0x10   :  { %p1381_p7 = pnand %p1380_p6, %p1374_p3 }
  0x12   :  { %1384 = shalt.err (!%p1381_p7)
}
  0x13   :  { %s1528_s19 = smov 512   ;;  %s1529_s20 = smov 32  }
  0x14   :  { %41 = dma.hbm_to_vmem [thread:$0]  %s2243_s1, 2048, %s36_s10, [#allocation6], %s1528_s19, %s1528_s19, %s1529_s20  }
  0x15   :  { %s1530_s23 = smov [#allocation2]   ;;  %s1531_s25 = smov [#allocation7]  }
  0x16   :  { %s26_s24 = sshll.u32 %s1530_s23, 4  ;;  %s47_s26 = sshll.u32 %s1531_s25, 4  ;;  %s27_s24 = int_to_ptr.vmem [resolvable:$true] %s26_s24  ;;  %s48_s26 = int_to_ptr.vmem [resolvable:$true] %s47_s26 }
  0x17   :  { %s1385_s29 = scalar_lea.hbm %s2242_s0, 128 }
  0x18   :  { %p1386_p8 = scmp.ne.s32.totalorder %s2242_s0, %s1385_s29  ;;  %p1389_p9 = scmp.lt.u32.totalorder %s1385_s29, %s2242_s0 }
  0x1a   :  { %p1391_p10 = pnand %p1389_p9, %p1386_p8 }
  0x1c   :  { %1394 = shalt.err (!%p1391_p10)
}
  0x1d   :  { %s1395_s1 = scalar_lea.vmem %s27_s24, 128  ;;  %p1400_p12 = scmp.lt.s32.totalorder %s27_s24, %s27_s24 }
  0x1e   :  { %p1396_p11 = scmp.ne.s32.totalorder %s27_s24, %s1395_s1  ;;  %p1401_p13 = scmp.lt.s32.totalorder %s1395_s1, %s1395_s1 }
  0x20   :  { %p1402_p0 = por %p1401_p13, %p1400_p12 }
  0x22   :  { %p1403_p1 = pnand %p1402_p0, %p1396_p11 }
  0x24   :  { %1406 = shalt.err (!%p1403_p1)
}
  0x25   :  { %29 = dma.hbm_to_vmem [thread:$0]  %s2242_s0, 128, %s27_s24, [#allocation3]  }
  0x26   :  { %s1407_s17 = scalar_lea.hbm %s2244_s2, 2048 }
  0x27   :  { %p1408_p2 = scmp.ne.s32.totalorder %s2244_s2, %s1407_s17  ;;  %p1411_p3 = scmp.lt.u32.totalorder %s1407_s17, %s2244_s2 }
  0x29   :  { %p1413_p4 = pnand %p1411_p3, %p1408_p2 }
  0x2b   :  { %1416 = shalt.err (!%p1413_p4)
}
  0x2c   :  { %s1417_s25 = scalar_lea.vmem %s48_s26, 2048  ;;  %p1422_p6 = scmp.lt.s32.totalorder %s48_s26, %s48_s26 }
  0x2d   :  { %p1418_p5 = scmp.ne.s32.totalorder %s48_s26, %s1417_s25  ;;  %p1423_p7 = scmp.lt.s32.totalorder %s1417_s25, %s1417_s25 }
  0x2f   :  { %p1424_p8 = por %p1423_p7, %p1422_p6 }
  0x31   :  { %p1425_p9 = pnand %p1424_p8, %p1418_p5 }
  0x33   :  { %1428 = shalt.err (!%p1425_p9)
}
  0x34   :  { %53 = dma.hbm_to_vmem [thread:$0]  %s2244_s2, 2048, %s48_s26, [#allocation6], %s1528_s19, %s1528_s19, %s1529_s20  }
  0x35   :  { %s1532_s27 = smov [#allocation8]   ;;  %s1429_s11 = scalar_lea.hbm %s2245_s3, 2048 }
  0x36   :  { %s59_s28 = sshll.u32 %s1532_s27, 4  ;;  %p1430_p10 = scmp.ne.s32.totalorder %s2245_s3, %s1429_s11  ;;  %s60_s28 = int_to_ptr.vmem [resolvable:$true] %s59_s28 }
  0x37   :  { %p1433_p11 = scmp.lt.u32.totalorder %s1429_s11, %s2245_s3 }
  0x39   :  { %p1435_p12 = pnand %p1433_p11, %p1430_p10 }
  0x3b   :  { %1438 = shalt.err (!%p1435_p12)
}
  0x3c   :  { %s1439_s14 = scalar_lea.vmem %s60_s28, 2048  ;;  %p1444_p0 = scmp.lt.s32.totalorder %s60_s28, %s60_s28 }
  0x3d   :  { %p1440_p13 = scmp.ne.s32.totalorder %s60_s28, %s1439_s14  ;;  %p1445_p1 = scmp.lt.s32.totalorder %s1439_s14, %s1439_s14 }
  0x3f   :  { %p1446_p2 = por %p1445_p1, %p1444_p0 }
  0x41   :  { %p1447_p3 = pnand %p1446_p2, %p1440_p13 }
  0x43   :  { %1450 = shalt.err (!%p1447_p3)
}
  0x44   :  { %65 = dma.hbm_to_vmem [thread:$0]  %s2245_s3, 2048, %s60_s28, [#allocation9], %s1528_s19, %s1528_s19, %s1529_s20  }
  0x45   :  { %1517 = dma.done.wait [#allocation3], 128  }
  0x46   :  { %1518 = vsyncadd [#allocation3], 4294967168 }
  0x47   :  { %1519 = dma.done.wait [#allocation6], 4096  }
  0x48   :  { %1520 = vsyncadd [#allocation6], 4294963200 }
  0x49   :  { %1521 = dma.done.wait [#allocation9], 2048  }
  0x4a   :  { %1522 = vsyncadd [#allocation9], 4294965248  ;;  %v1645_v0 = vld [vmem:[#allocation7 + $0x8] sm:$0xff]  ;;  %v1651_v6 = vld [vmem:[#allocation7 + $0x18] sm:$0xff] }
  0x4b   :  { %v1647_v1 = vld [vmem:[#allocation7 + $0x28] sm:$0xff]  ;;  %v118_v2 = vand.u32 2147483647, %v1645_v0  ;;  %v1653_v7 = vld [vmem:[#allocation7 + $0x38] sm:$0xff]  ;;  %v120_v8 = vand.u32 2147483647, %v1651_v6 }
  0x4c   :  { %v122_v3 = vand.u32 2147483647, %v1647_v1  ;;  %v124_v11 = vand.u32 2147483647, %v1653_v7  ;;  %v1657_v13 = vld [vmem:[#allocation7] sm:$0xff]  ;;  %v1661_v16 = vld [vmem:[#allocation8 + $0x8] sm:$0xff] }
  0x4d   :  { %v134_v4 = vsub.f32 0.0, %v118_v2  ;;  %v136_v12 = vsub.f32 0.0, %v120_v8  ;;  %v1659_v14 = vld [vmem:[#allocation7 + $0x20] sm:$0xff]  ;;  %v1663_v18 = vld [vmem:[#allocation7 + $0x10] sm:$0xff]  ;;  %v117_v21 = vand.u32 2147483647, %v1657_v13 }
  0x4e   :  { %v138_v5 = vsub.f32 0.0, %v122_v3  ;;  %v140_v15 = vsub.f32 0.0, %v124_v11  ;;  %v1665_v19 = vld [vmem:[#allocation7 + $0x30] sm:$0xff]  ;;  %v121_v22 = vand.u32 2147483647, %v1659_v14  ;;  %v102_v23 = vmax.f32 %v1645_v0, 0.0 }
  0x4f   :  { %v151_v9 = vmul.f32 1.442695, %v134_v4  ;;  %v155_v17 = vmul.f32 1.442695, %v136_v12  ;;  %v1670_v24 = vld [vmem:[#allocation8 + $0x28] sm:$0xff]  ;;  %v971_v25 = vmul.f32 0.5, %v1661_v16 }
  0x50   :  { %v159_v10 = vmul.f32 1.442695, %v138_v5  ;;  %v163_v20 = vmul.f32 1.442695, %v140_v15  ;;  %v975_v26 = vmul.f32 0.5, %v1670_v24  ;;  %v133_v27 = vsub.f32 0.0, %v117_v21 }
  0x51   :  { %1193 = vpow2.f32 %v151_v9  ;;  %v137_v28 = vsub.f32 0.0, %v121_v22  ;;  %v1674_v29 = vld [vmem:[#allocation8 + $0x18] sm:$0xff]  ;;  %v119_v31 = vand.u32 2147483647, %v1663_v18  ;;  %v123_v32 = vand.u32 2147483647, %v1665_v19 }
  0x52   :  { %1195 = vpow2.f32 %v159_v10  ;;  %v1676_v30 = vld [vmem:[#allocation8 + $0x38] sm:$0xff]  ;;  %v973_v33 = vmul.f32 0.5, %v1674_v29  ;;  %v149_v35 = vmul.f32 1.442695, %v133_v27  ;;  %v106_v37 = vmax.f32 %v1647_v1, 0.0  ;;  %v1686_v39 = vld [vmem:[#allocation8] sm:$0xff] }
  0x53   :  { %1197 = vpow2.f32 %v155_v17  ;;  %v977_v34 = vmul.f32 0.5, %v1676_v30  ;;  %v157_v36 = vmul.f32 1.442695, %v137_v28  ;;  %v1684_v38 = vmul.f32 %v971_v25, %v1661_v16  ;;  %v1688_v40 = vld [vmem:[#allocation8 + $0x20] sm:$0xff]  ;;  %v1705_v54 = vld [vmem:[#allocation7 + $0x48] sm:$0xff]  ;;  %v1715_v63 = vld [vmem:[#allocation8 + $0x10] sm:$0xff] }
  0x54   :  { %1199 = vpow2.f32 %v163_v20  ;;  %v135_v41 = vsub.f32 0.0, %v119_v31  ;;  %v139_v42 = vsub.f32 0.0, %v123_v32  ;;  %v104_v43 = vmax.f32 %v1651_v6, 0.0  ;;  %v1717_v2 = vld [vmem:[#allocation8 + $0x30] sm:$0xff]  ;;  %v1721_v8 = vld [vmem:[#allocation7 + $0x68] sm:$0xff] }
  0x55   :  { %1201 = vpow2.f32 %v149_v35  ;;  %v970_v44 = vmul.f32 0.5, %v1686_v39  ;;  %v974_v45 = vmul.f32 0.5, %v1688_v40  ;;  %v1694_v46 = vmul.f32 %v975_v26, %v1670_v24 }
  0x56   :  { %v108_v47 = vmax.f32 %v1653_v7, 0.0  ;;  %1203 = vpow2.f32 %v157_v36  ;;  %v153_v48 = vmul.f32 1.442695, %v135_v41  ;;  %v1698_v50 = vmul.f32 %v973_v33, %v1674_v29 }
  0x57   :  { %v1701_v51 = vmul.f32 %v977_v34, %v1676_v30  ;;  %v101_v52 = vmax.f32 %v1657_v13, 0.0  ;;  %v105_v53 = vmax.f32 %v1659_v14, 0.0  ;;  %v161_v59 = vmul.f32 1.442695, %v139_v42 }
  0x58   :  { %v1710_v61 = vmul.f32 %v970_v44, %v1686_v39  ;;  %v1713_v62 = vmul.f32 %v974_v45, %v1688_v40  ;;  %1205 = vpow2.f32 %v153_v48  ;;  %v972_v4 = vmul.f32 0.5, %v1715_v63 }
  0x59   :  { %v976_v5 = vmul.f32 0.5, %v1717_v2  ;;  %v126_v9 = vand.u32 2147483647, %v1705_v54  ;;  %v130_v26 = vand.u32 2147483647, %v1721_v8 }
  0x5a   :  { %v1728_v28 = vmul.f32 %v972_v4, %v1715_v63 }
  0x5b   :  { %v1194_v49 = vpop.eup %1193  ;;  %v1731_v31 = vmul.f32 %v976_v5, %v1717_v2  ;;  %v142_v36 = vsub.f32 0.0, %v126_v9  ;;  %v146_v4 = vsub.f32 0.0, %v130_v26 }
  0x5c   :  { %v1196_v55 = vpop.eup %1195  ;;  %v190_v56 = vadd.f32 1.0, %v1194_v49  ;;  %v193_v11 = vmul.f32 -0.5, %v1194_v49  ;;  %v196_v12 = vand.u32 2147483647, %v1194_v49 }
  0x5d   :  { %v226_v60 = vadd.f32 1.0, %v1196_v55  ;;  %v1198_v3 = vpop.eup %1197  ;;  %v229_v17 = vmul.f32 -0.5, %v1196_v55  ;;  %v232_v35 = vand.u32 2147483647, %v1196_v55  ;;  %v1747_v26 = vmul.f32 1.442695, %v142_v36 }
  0x5e   :  { %1207 = vlog2.f32 %v190_v56  ;;  %v1200_v10 = vpop.eup %1199  ;;  %v208_v15 = vadd.f32 1.0, %v1198_v3  ;;  %v211_v22 = vmul.f32 -0.5, %v1198_v3  ;;  %v194_v33 = vadd.f32 1.0, %v193_v11 }
  0x5f   :  { %1209 = vlog2.f32 %v226_v60  ;;  %v244_v20 = vadd.f32 1.0, %v1200_v10  ;;  %v247_v27 = vmul.f32 -0.5, %v1200_v10  ;;  %v1202_v32 = vpop.eup %1201  ;;  %vm1733_vm0 = vcmp.lt.f32.partialorder %v196_v12, 0.0004427343 }
  0x60   :  { %1211 = vpow2.f32 %v161_v59  ;;  %v1204_v41 = vpop.eup %1203  ;;  %v230_v42 = vadd.f32 1.0, %v229_v17  ;;  %v214_v44 = vand.u32 2147483647, %v1198_v3  ;;  %v181_v45 = vadd.f32 1.0, %v1202_v32 }
  0x61   :  { %1213 = vlog2.f32 %v208_v15  ;;  %v184_v48 = vmul.f32 -0.5, %v1202_v32  ;;  %v212_v56 = vadd.f32 1.0, %v211_v22  ;;  %v250_v59 = vand.u32 2147483647, %v1200_v10 }
  0x62   :  { %1215 = vlog2.f32 %v244_v20  ;;  %v217_v60 = vadd.f32 1.0, %v1204_v41  ;;  %v248_v15 = vadd.f32 1.0, %v247_v27  ;;  %v187_v5 = vand.u32 2147483647, %v1202_v32  ;;  %v1737_v11 = vpop.eup %1205 }
  0x63   :  { %1217 = vlog2.f32 %v181_v45  ;;  %v220_v20 = vmul.f32 -0.5, %v1204_v41  ;;  %v195_v12 = vmul.f32 %v1194_v49, %v194_v33  ;;  %v185_v25 = vadd.f32 1.0, %v184_v48 }
  0x64   :  { %1219 = vlog2.f32 %v217_v60  ;;  %v223_v21 = vand.u32 2147483647, %v1204_v41  ;;  %v231_v58 = vmul.f32 %v1196_v55, %v230_v42  ;;  %vm1739_vm1 = vcmp.lt.f32.partialorder %v232_v35, 0.0004427343 }
  0x65   :  { %vm1743_vm2 = vcmp.lt.f32.partialorder %v214_v44, 0.0004427343  ;;  %v213_v57 = vmul.f32 %v1198_v3, %v212_v56  ;;  %vm1749_vm3 = vcmp.lt.f32.partialorder %v250_v59, 0.0004427343  ;;  %v1753_v33 = vmul.f32 1.442695, %v146_v4 }
  0x66   :  { %v249_v42 = vmul.f32 %v1200_v10, %v248_v15  ;;  %vm1757_vm4 = vcmp.lt.f32.partialorder %v187_v5, 0.0004427343  ;;  %v221_v48 = vadd.f32 1.0, %v220_v20  ;;  %v186_v3 = vmul.f32 %v1202_v32, %v185_v25  ;;  %v374_v25 = vld [vmem:[#allocation5 + $0x8] sm:$0xff] }
  0x67   :  { %vm1763_vm5 = vcmp.lt.f32.partialorder %v223_v21, 0.0004427343  ;;  %v199_v59 = vadd.f32 1.0, %v1737_v11  ;;  %v202_v20 = vmul.f32 -0.5, %v1737_v11  ;;  %v205_v32 = vand.u32 2147483647, %v1737_v11 }
  0x68   :  { %v1208_v9 = vpop.eup %1207 }
  0x69   :  { %v1210_v27 = vpop.eup %1209  ;;  %v192_v45 = vmul.f32 0.6931472, %v1208_v9  ;;  %v378_v9 = vld [vmem:[#allocation5 + $0x28] sm:$0xff]  ;;  %vm1822_vm6 = vcmp.lt.f32.partialorder %v205_v32, 0.0004427343 }
  0x6a   :  { %v1755_v55 = vpop.eup %1211  ;;  %v228_v35 = vmul.f32 0.6931472, %v1210_v27 }
  0x6b   :  { %v1214_v36 = vpop.eup %1213  ;;  %v198_v60 = vsel %vm1733_vm0, %v195_v12, %v192_v45  ;;  %v235_v12 = vadd.f32 1.0, %v1755_v55  ;;  %v238_v22 = vmul.f32 -0.5, %v1755_v55 }
  0x6c   :  { %v1216_v4 = vpop.eup %1215  ;;  %v234_v10 = vsel %vm1739_vm1, %v231_v58, %v228_v35  ;;  %v326_v15 = vadd.f32 %v198_v60, %v102_v23  ;;  %v210_v5 = vmul.f32 0.6931472, %v1214_v36  ;;  %v222_v23 = vmul.f32 %v1204_v41, %v221_v48  ;;  %v380_v48 = vld [vmem:[#allocation5 + $0x38] sm:$0xff] }
  0x6d   :  { %v330_v34 = vadd.f32 %v234_v10, %v106_v37  ;;  %v246_v21 = vmul.f32 0.6931472, %v1216_v4  ;;  %v1218_v17 = vpop.eup %1217  ;;  %v203_v10 = vadd.f32 1.0, %v202_v20  ;;  %v241_v20 = vand.u32 2147483647, %v1755_v55 }
  0x6e   :  { %v390_v27 = vmul.f32 %v1661_v16, %v326_v15  ;;  %1221 = vlog2.f32 %v326_v15  ;;  %v216_v0 = vsel %vm1743_vm2, %v213_v57, %v210_v5  ;;  %v376_v16 = vld [vmem:[#allocation5 + $0x18] sm:$0xff]  ;;  %v1220_v57 = vpop.eup %1219  ;;  %v183_v49 = vmul.f32 0.6931472, %v1218_v17 }
  0x6f   :  { %v394_v58 = vmul.f32 %v1670_v24, %v330_v34  ;;  %1223 = vlog2.f32 %v330_v34  ;;  %v252_v1 = vsel %vm1749_vm3, %v249_v42, %v246_v21  ;;  %v328_v37 = vadd.f32 %v216_v0, %v104_v43 }
  0x70   :  { %v406_v45 = vadd.f32 %v390_v27, %v374_v25  ;;  %v332_v35 = vadd.f32 %v252_v1, %v108_v47  ;;  %1225 = vlog2.f32 %v199_v59  ;;  %v219_v43 = vmul.f32 0.6931472, %v1220_v57 }
  0x71   :  { %v410_v41 = vadd.f32 %v394_v58, %v378_v9  ;;  %v392_v24 = vmul.f32 %v1674_v29, %v328_v37  ;;  %1227 = vlog2.f32 %v328_v37  ;;  %v189_v60 = vsel %vm1757_vm4, %v186_v3, %v183_v49  ;;  %v377_v58 = vld [vmem:[#allocation5 + $0x20] sm:$0xff] }
  0x72   :  { %v1789_v42 = vmul.f32 %v406_v45, %v406_v45  ;;  %v396_v6 = vmul.f32 %v1676_v30, %v332_v35  ;;  %1229 = vlog2.f32 %v332_v35  ;;  %v225_v29 = vsel %vm1763_vm5, %v222_v23, %v219_v43 }
  0x73   :  { %v1166_v36 = vpack.c.bf16 %v410_v41, %v406_v45  ;;  %v1792_v7 = vmul.f32 %v410_v41, %v410_v41  ;;  %v408_v47 = vadd.f32 %v392_v24, %v376_v16  ;;  %v1804_v5 = vadd.f32 %v189_v60, %v101_v52  ;;  %v373_v52 = vld [vmem:[#allocation5] sm:$0xff]  ;;  %v1833_v60 = vld [vmem:[#allocation7 + $0x58] sm:$0xff] }
  0x74   :  { %v668_v59 = vmul.f32 11009.538, %v1789_v42  ;;  %v412_v4 = vadd.f32 %v396_v6, %v380_v48  ;;  %1231 = vlog2.f32 %v235_v12  ;;  %v239_v25 = vadd.f32 1.0, %v238_v22 }
  0x75   :  { %1167 = vmatprep.subr.bf16.mxu0 %v1166_v36  ;;  %v672_v15 = vmul.f32 11009.538, %v1792_v7  ;;  %v1800_v30 = vmul.f32 %v408_v47, %v408_v47  ;;  %v1810_v56 = vadd.f32 %v225_v29, %v105_v53  ;;  %1233 = vpow2.f32 %v1747_v26 }
  0x76   :  { %v684_v34 = vsub.f32 4.0, %v668_v59  ;;  %v1174_v44 = vpack.c.bf16 %v412_v4, %v408_v47  ;;  %v1806_v3 = vmul.f32 %v412_v4, %v412_v4  ;;  %v389_v12 = vmul.f32 %v1686_v39, %v1804_v5 }
  0x77   :  { %v688_v21 = vsub.f32 4.0, %v672_v15  ;;  %v670_v13 = vmul.f32 11009.538, %v1800_v30  ;;  %v1818_v0 = vmul.f32 %v1737_v11, %v203_v10  ;;  %v393_v1 = vmul.f32 %v1688_v40, %v1810_v56 }
  0x78   :  { %v1222_v9 = vpop.eup %1221  ;;  %v701_v27 = vmul.f32 1.442695, %v684_v34  ;;  %1175 = vmatprep.subr.bf16.mxu1 %v1174_v44  ;;  %1235 = vpow2.f32 %v1753_v33  ;;  %v674_v39 = vmul.f32 11009.538, %v1806_v3  ;;  %v240_v11 = vmul.f32 %v1755_v55, %v239_v25 }
  0x79   :  { %v1224_v23 = vpop.eup %1223  ;;  %v709_v14 = vmul.f32 1.442695, %v688_v21  ;;  %v925_v53 = vmul.f32 0.6931472, %v1222_v9  ;;  %v686_v16 = vsub.f32 4.0, %v670_v13  ;;  %v405_v22 = vadd.f32 %v389_v12, %v373_v52 }
  0x7a   :  { %v1226_v37 = vpop.eup %1225  ;;  %1237 = vpow2.f32 %v701_v27  ;;  %v933_v17 = vmul.f32 0.6931472, %v1224_v23  ;;  %v690_v32 = vsub.f32 4.0, %v674_v39  ;;  %v409_v48 = vadd.f32 %v393_v1, %v377_v58 }
  0x7b   :  { %v1228_v45 = vpop.eup %1227  ;;  %1239 = vpow2.f32 %v709_v14  ;;  %v955_v35 = vsub.f32 -0.9189385, %v925_v53  ;;  %v705_v33 = vmul.f32 1.442695, %v686_v16  ;;  %v1830_v6 = vmul.f32 %v405_v22, %v405_v22 }
  0x7c   :  { %v1230_v57 = vpop.eup %1229  ;;  %v959_v40 = vsub.f32 -0.9189385, %v933_v17  ;;  %v929_v41 = vmul.f32 0.6931472, %v1228_v45  ;;  %v713_v36 = vmul.f32 1.442695, %v690_v32  ;;  %v1168_v47 = vpack.c.bf16 %v409_v48, %v405_v22 }
  0x7d   :  { %v1003_v24 = vsub.f32 %v955_v35, %v1684_v38  ;;  %v937_v49 = vmul.f32 0.6931472, %v1230_v57  ;;  %v1836_v4 = vmul.f32 3.694528, %v1789_v42  ;;  %1241 = vpow2.f32 %v705_v33  ;;  %v375_v45 = vld [vmem:[#allocation5 + $0x10] sm:$0xff] }
  0x7e   :  { %v1007_v43 = vsub.f32 %v959_v40, %v1694_v46  ;;  %v957_v55 = vsub.f32 -0.9189385, %v929_v41  ;;  %v1232_v59 = vpop.eup %1231  ;;  %v1838_v10 = vmul.f32 %v409_v48, %v409_v48  ;;  %1243 = vpow2.f32 %v713_v36  ;;  %1169 = vmatpush1.bf16.msra.mxu0 %v1168_v47 }
  0x7f   :  { %v961_v29 = vsub.f32 -0.9189385, %v937_v49  ;;  %v667_v46 = vmul.f32 11009.538, %v1830_v6  ;;  %v1844_v34 = vpop.eup %1233  ;;  %vm1848_vm7 = vcmp.lt.f32.partialorder %v241_v20, 0.0004427343  ;;  %1245 = vlog2.f32 %v1804_v5 }
  0x80   :  { %v1840_v38 = vadd.f32 %v1007_v43, %v1003_v24  ;;  %v1005_v15 = vsub.f32 %v957_v55, %v1698_v50  ;;  %v671_v25 = vmul.f32 11009.538, %v1838_v10  ;;  %v128_v21 = vand.u32 2147483647, %v1833_v60 }
  0x81   :  { %v1009_v44 = vsub.f32 %v961_v29, %v1701_v51  ;;  %v683_v9 = vsub.f32 4.0, %v667_v46  ;;  %v201_v27 = vmul.f32 0.6931472, %v1226_v37  ;;  %v237_v50 = vmul.f32 0.6931472, %v1232_v59 }
  0x82   :  { %v1854_v13 = vpop.eup %1235  ;;  %v1857_v52 = vmul.f32 3.694528, %v1792_v7  ;;  %v687_v51 = vsub.f32 4.0, %v671_v25  ;;  %1247 = vlog2.f32 %v1810_v56  ;;  %v652_v23 = vsub.f32 0.08106147, %v1836_v4 }
  0x83   :  { %v1859_v12 = vadd.f32 %v1009_v44, %v1005_v15  ;;  %v699_v14 = vmul.f32 1.442695, %v683_v9  ;;  %v207_v5 = vsel %vm1822_vm6, %v1818_v0, %v201_v27  ;;  %v243_v53 = vsel %vm1848_vm7, %v240_v11, %v237_v50  ;;  %v379_v0 = vld [vmem:[#allocation5 + $0x30] sm:$0xff] }
  0x84   :  { %v1238_v20 = vpop.eup %1237  ;;  %v707_v7 = vmul.f32 1.442695, %v687_v51  ;;  %v2268_v37 = vmax.f32 %v1663_v18, 0.0  ;;  %v2269_v39 = vmax.f32 %v1665_v19, 0.0  ;;  %v1873_v16 = vmul.f32 3.694528, %v1800_v30 }
  0x85   :  { %v1240_v58 = vpop.eup %1239  ;;  %v732_v1 = vmul.f32 0.5, %v1238_v20  ;;  %v1876_v26 = vmul.f32 3.694528, %v1806_v3  ;;  %1249 = vpow2.f32 %v699_v14  ;;  %v656_v57 = vsub.f32 0.08106147, %v1857_v52 }
  0x86   :  { %v327_v17 = vadd.f32 %v207_v5, %v2268_v37  ;;  %v331_v56 = vadd.f32 %v243_v53, %v2269_v39  ;;  %v736_v35 = vmul.f32 0.5, %v1240_v58  ;;  %1251 = vpow2.f32 %v707_v7  ;;  %v1936_v58 = vld [vmem:[#allocation7 + $0x40] sm:$0xff] }
  0x87   :  { %v748_v11 = vadd.f32 0.5, %v732_v1  ;;  %v262_v40 = vadd.f32 1.0, %v1844_v34  ;;  %v1242_v32 = vpop.eup %1241  ;;  %v265_v3 = vmul.f32 -0.5, %v1844_v34  ;;  %v654_v24 = vsub.f32 0.08106147, %v1873_v16  ;;  %v369_v16 = vld [vmem:[#allocation8 + $0x68] sm:$0xff] }
  0x88   :  { %v391_v22 = vmul.f32 %v1715_v63, %v327_v17  ;;  %v395_v18 = vmul.f32 %v1717_v2, %v331_v56  ;;  %v752_v19 = vadd.f32 0.5, %v736_v35  ;;  %1253 = vlog2.f32 %v327_v17  ;;  %v1244_v48 = vpop.eup %1243 }
  0x89   :  { %1255 = vlog2.f32 %v748_v11  ;;  %v658_v63 = vsub.f32 0.08106147, %v1876_v26  ;;  %v734_v33 = vmul.f32 0.5, %v1242_v32  ;;  %v738_v2 = vmul.f32 0.5, %v1244_v48  ;;  %v1246_v55 = vpop.eup %1245  ;;  %v1904_v11 = vld [vmem:[#allocation7 + $0x78] sm:$0xff] }
  0x8a   :  { %v407_v30 = vadd.f32 %v391_v22, %v375_v45  ;;  %v411_v41 = vadd.f32 %v395_v18, %v379_v0  ;;  %1257 = vlog2.f32 %v752_v19  ;;  %v268_v59 = vand.u32 2147483647, %v1844_v34 }
  0x8b   :  { %v750_v47 = vadd.f32 0.5, %v734_v33  ;;  %1259 = vlog2.f32 %v331_v56  ;;  %v298_v29 = vadd.f32 1.0, %v1854_v13  ;;  %v754_v46 = vadd.f32 0.5, %v738_v2 }
  0x8c   :  { %v1176_v49 = vpack.c.bf16 %v411_v41, %v407_v30  ;;  %v1885_v43 = vmul.f32 %v407_v30, %v407_v30  ;;  %v1887_v36 = vmul.f32 %v411_v41, %v411_v41  ;;  %v1248_v15 = vpop.eup %1247  ;;  %v923_v44 = vmul.f32 0.6931472, %v1246_v55 }
  0x8d   :  { %1261 = vlog2.f32 %v262_v40  ;;  %v266_v25 = vadd.f32 1.0, %v265_v3  ;;  %v931_v42 = vmul.f32 0.6931472, %v1248_v15  ;;  %v301_v27 = vmul.f32 -0.5, %v1854_v13 }
  0x8e   :  { %1177 = vmatpush1.bf16.msra.mxu1 %v1176_v49  ;;  %1263 = vlog2.f32 %v750_v47  ;;  %v669_v9 = vmul.f32 11009.538, %v1885_v43  ;;  %v1894_v50 = vmul.f32 3.694528, %v1830_v6  ;;  %v954_v51 = vsub.f32 -0.9189385, %v923_v44 }
  0x8f   :  { %1265 = vlog2.f32 %v754_v46  ;;  %v673_v20 = vmul.f32 11009.538, %v1887_v36  ;;  %v1250_v14 = vpop.eup %1249  ;;  %v958_v5 = vsub.f32 -0.9189385, %v931_v42  ;;  %vm1897_vm8 = vcmp.lt.f32.partialorder %v268_v59, 0.0004427343 }
  0x90   :  { %v685_v53 = vsub.f32 4.0, %v669_v9  ;;  %1267 = vlog2.f32 %v298_v29  ;;  %v1252_v1 = vpop.eup %1251  ;;  %v731_v7 = vmul.f32 0.5, %v1250_v14  ;;  %v1002_v37 = vsub.f32 %v954_v51, %v1710_v61  ;;  %v1921_v51 = vld [vmem:[#allocation8 + $0x48] sm:$0xff] }
  0x91   :  { %v689_v17 = vsub.f32 4.0, %v673_v20  ;;  %v267_v39 = vmul.f32 %v1844_v34, %v266_v25  ;;  %v735_v56 = vmul.f32 0.5, %v1252_v1  ;;  %v1006_v45 = vsub.f32 %v958_v5, %v1713_v62 }
  0x92   :  { %v1254_v6 = vpop.eup %1253  ;;  %v703_v35 = vmul.f32 1.442695, %v685_v53  ;;  %v302_v0 = vadd.f32 1.0, %v301_v27  ;;  %v747_v18 = vadd.f32 0.5, %v731_v7  ;;  %v144_v32 = vsub.f32 0.0, %v128_v21 }
  0x93   :  { %v1256_v22 = vpop.eup %1255  ;;  %v711_v19 = vmul.f32 1.442695, %v689_v17  ;;  %v927_v40 = vmul.f32 0.6931472, %v1254_v6  ;;  %v751_v41 = vadd.f32 0.5, %v735_v56  ;;  %v1908_v3 = vadd.f32 %v1006_v45, %v1002_v37  ;;  %v382_v37 = vld [vmem:[#allocation5 + $0x48] sm:$0xff] }
  0x94   :  { %v1258_v30 = vpop.eup %1257  ;;  %v766_v61 = vmul.f32 0.6931472, %v1256_v22  ;;  %1269 = vpow2.f32 %v703_v35  ;;  %v132_v48 = vand.u32 2147483647, %v1904_v11  ;;  %v304_v49 = vand.u32 2147483647, %v1854_v13 }
  0x95   :  { %v774_v34 = vmul.f32 0.6931472, %v1258_v30  ;;  %1271 = vlog2.f32 %v747_v18  ;;  %v956_v62 = vsub.f32 -0.9189385, %v927_v40  ;;  %v1260_v33 = vpop.eup %1259  ;;  %v171_v55 = vmul.f32 1.442695, %v144_v32 }
  0x96   :  { %v796_v2 = vadd.f32 %v766_v61, %v652_v23  ;;  %1273 = vlog2.f32 %v751_v41  ;;  %v935_v59 = vmul.f32 0.6931472, %v1260_v33  ;;  %v639_v46 = vmul.f32 3.694528, %v1838_v10  ;;  %v386_v56 = vld [vmem:[#allocation5 + $0x68] sm:$0xff]  ;;  %v1948_v18 = vld [vmem:[#allocation7 + $0x60] sm:$0xff] }
  0x97   :  { %v1262_v21 = vpop.eup %1261  ;;  %v800_v47 = vadd.f32 %v774_v34, %v656_v57  ;;  %1275 = vpow2.f32 %v711_v19  ;;  %v1004_v29 = vsub.f32 %v956_v62, %v1728_v28  ;;  %v148_v25 = vsub.f32 0.0, %v132_v48 }
  0x98   :  { %v1264_v15 = vpop.eup %1263  ;;  %v264_v44 = vmul.f32 0.6931472, %v1262_v21  ;;  %1277 = vpow2.f32 %v171_v55  ;;  %v960_v9 = vsub.f32 -0.9189385, %v935_v59  ;;  %v303_v27 = vmul.f32 %v1854_v13, %v302_v0 }
  0x99   :  { %v1266_v4 = vpop.eup %1265  ;;  %v1918_v23 = vadd.f32 %v800_v47, %v796_v2  ;;  %v770_v42 = vmul.f32 0.6931472, %v1264_v15  ;;  %vm1925_vm9 = vcmp.lt.f32.partialorder %v304_v49, 0.0004427343  ;;  %v179_v10 = vmul.f32 1.442695, %v148_v25 }
  0x9a   :  { %v1268_v52 = vpop.eup %1267  ;;  %v778_v57 = vmul.f32 0.6931472, %v1266_v4  ;;  %v270_v28 = vsel %vm1897_vm8, %v267_v39, %v264_v44  ;;  %v1008_v5 = vsub.f32 %v960_v9, %v1731_v31  ;;  %v2274_v13 = vmax.f32 %v1705_v54, 0.0 }
  0x9b   :  { %v798_v14 = vadd.f32 %v770_v42, %v654_v24  ;;  %v300_v53 = vmul.f32 0.6931472, %v1268_v52  ;;  %1279 = vpow2.f32 %v179_v10  ;;  %v651_v54 = vsub.f32 0.08106147, %v1894_v50 }
  0x9c   :  { %v334_v1 = vadd.f32 %v270_v28, %v2274_v13  ;;  %v802_v7 = vadd.f32 %v778_v57, %v658_v63  ;;  %v1938_v17 = vadd.f32 %v1008_v5, %v1004_v29  ;;  %v2275_v26 = vmax.f32 %v1721_v8, 0.0 }
  0x9d   :  { %v306_v39 = vsel %vm1925_vm9, %v303_v27, %v300_v53  ;;  %v655_v35 = vsub.f32 0.08106147, %v639_v46  ;;  %v125_v19 = vand.u32 2147483647, %v1936_v58  ;;  %v979_v8 = vmul.f32 0.5, %v1921_v51 }
  0x9e   :  { %v398_v24 = vmul.f32 %v1921_v51, %v334_v1  ;;  %1281 = vlog2.f32 %v334_v1  ;;  %v1270_v31 = vpop.eup %1269  ;;  %v1943_v6 = vadd.f32 %v802_v7, %v798_v14  ;;  %v338_v63 = vadd.f32 %v306_v39, %v2275_v26 }
  0x9f   :  { %v1272_v45 = vpop.eup %1271  ;;  %v733_v0 = vmul.f32 0.5, %v1270_v31  ;;  %v129_v49 = vand.u32 2147483647, %v1948_v18  ;;  %v141_v47 = vsub.f32 0.0, %v125_v19  ;;  %v983_v4 = vmul.f32 0.5, %v369_v16 }
  0xa0   :  { %v414_v22 = vadd.f32 %v398_v24, %v382_v37  ;;  %v1274_v40 = vpop.eup %1273  ;;  %v764_v32 = vmul.f32 0.6931472, %v1272_v45  ;;  %v402_v30 = vmul.f32 %v369_v16, %v338_v63  ;;  %1283 = vlog2.f32 %v338_v63  ;;  %v1970_v45 = vld [vmem:[#allocation7 + $0x50] sm:$0xff] }
  0xa1   :  { %v1276_v61 = vpop.eup %1275  ;;  %v772_v41 = vmul.f32 0.6931472, %v1274_v40  ;;  %v749_v34 = vadd.f32 0.5, %v733_v0  ;;  %v112_v27 = vmax.f32 %v1833_v60, 0.0  ;;  %v145_v52 = vsub.f32 0.0, %v129_v49 }
  0xa2   :  { %v1951_v50 = vmul.f32 %v414_v22, %v414_v22  ;;  %v1954_v62 = vpop.eup %1277  ;;  %v795_v48 = vadd.f32 %v764_v32, %v651_v54  ;;  %v737_v33 = vmul.f32 0.5, %v1276_v61  ;;  %v418_v2 = vadd.f32 %v402_v30, %v386_v56 }
  0xa3   :  { %v799_v55 = vadd.f32 %v772_v41, %v655_v35  ;;  %1285 = vlog2.f32 %v749_v34  ;;  %v280_v46 = vadd.f32 1.0, %v1954_v62  ;;  %v165_v10 = vmul.f32 1.442695, %v141_v47 }
  0xa4   :  { %v676_v21 = vmul.f32 11009.538, %v1951_v50  ;;  %v753_v59 = vadd.f32 0.5, %v737_v33  ;;  %v1170_v29 = vpack.c.bf16 %v418_v2, %v414_v22  ;;  %v1958_v15 = vmul.f32 %v418_v2, %v418_v2 }
  0xa5   :  { %v1961_v44 = vadd.f32 %v799_v55, %v795_v48  ;;  %v1280_v42 = vpop.eup %1279  ;;  %v995_v53 = vmul.f32 %v979_v8, %v1921_v51  ;;  %v283_v13 = vmul.f32 -0.5, %v1954_v62  ;;  %v637_v1 = vmul.f32 3.694528, %v1885_v43 }
  0xa6   :  { %v692_v25 = vsub.f32 4.0, %v676_v21  ;;  %1287 = vlog2.f32 %v753_v59  ;;  %1171 = vmatprep.subr.bf16.mxu0 %v1170_v29  ;;  %v680_v9 = vmul.f32 11009.538, %v1958_v15  ;;  %v316_v20 = vadd.f32 1.0, %v1280_v42 }
  0xa7   :  { %1289 = vlog2.f32 %v280_v46  ;;  %v999_v7 = vmul.f32 %v983_v4, %v369_v16  ;;  %v116_v37 = vmax.f32 %v1904_v11, 0.0  ;;  %v641_v24 = vmul.f32 3.694528, %v1887_v36  ;;  %v1973_v16 = vld [vmem:[#allocation7 + $0x70] sm:$0xff]  ;;  %v1978_v36 = vld [vmem:[%s2247_s5] sm:$0xf] }
  0xa8   :  { %v1282_v57 = vpop.eup %1281  ;;  %v717_v28 = vmul.f32 1.442695, %v692_v25  ;;  %v696_v14 = vsub.f32 4.0, %v680_v9  ;;  %v319_v63 = vmul.f32 -0.5, %v1280_v42  ;;  %v173_v56 = vmul.f32 1.442695, %v145_v52 }
  0xa9   :  { %v941_v5 = vmul.f32 0.6931472, %v1282_v57  ;;  %v284_v35 = vadd.f32 1.0, %v283_v13  ;;  %v286_v43 = vand.u32 2147483647, %v1954_v62  ;;  %v1533_v13 = vmov 0.0  }
  0xaa   :  { %1291 = vpow2.f32 %v717_v28  ;;  %v1284_v39 = vpop.eup %1283  ;;  %v725_v31 = vmul.f32 1.442695, %v696_v14  ;;  %v653_v22 = vsub.f32 0.08106147, %v637_v1  ;;  %v322_v30 = vand.u32 2147483647, %v1280_v42  ;;  %514 = vmatprep.mubr.f32.mxu0 %v1533_v13  ;;  %585 = vmatprep.mubr.f32.mxu1 %v1533_v13 }
  0xab   :  { %v963_v54 = vsub.f32 -0.9189385, %v941_v5  ;;  %1293 = vlog2.f32 %v316_v20  ;;  %v949_v26 = vmul.f32 0.6931472, %v1284_v39  ;;  %v127_v61 = vand.u32 2147483647, %v1970_v45 }
  0xac   :  { %1295 = vpow2.f32 %v165_v10  ;;  %v657_v41 = vsub.f32 0.08106147, %v641_v24  ;;  %v320_v8 = vadd.f32 1.0, %v319_v63  ;;  %v131_v48 = vand.u32 2147483647, %v1973_v16  ;;  %v367_v5 = vld [vmem:[#allocation8 + $0x58] sm:$0xff] }
  0xad   :  { %1297 = vpow2.f32 %v725_v31  ;;  %v1011_v51 = vsub.f32 %v963_v54, %v995_v53  ;;  %v1286_v0 = vpop.eup %1285  ;;  %v967_v19 = vsub.f32 -0.9189385, %v949_v26  ;;  %v285_v2 = vmul.f32 %v1954_v62, %v284_v35  ;;  %v384_v54 = vld [vmem:[#allocation5 + $0x58] sm:$0xff] }
  0xae   :  { %1299 = vpow2.f32 %v173_v56  ;;  %v768_v40 = vmul.f32 0.6931472, %v1286_v0  ;;  %vm1984_vm10 = vcmp.lt.f32.partialorder %v286_v43, 0.0004427343  ;;  %v143_v55 = vsub.f32 0.0, %v127_v61  ;;  %v371_v43 = vld [vmem:[#allocation8 + $0x78] sm:$0xff] }
  0xaf   :  { %v1028_v32 = vadd.f32 %v1840_v38, %v1011_v51  ;;  %v1015_v34 = vsub.f32 %v967_v19, %v999_v7  ;;  %v342_v21 = vand.u32 2147483647, %v1978_v36  ;;  %v147_v46 = vsub.f32 0.0, %v131_v48 }
  0xb0   :  { %v1288_v33 = vpop.eup %1287  ;;  %v797_v59 = vadd.f32 %v768_v40, %v653_v22  ;;  %vm1991_vm11 = vcmp.lt.f32.partialorder %v322_v30, 0.0004427343  ;;  %v169_v9 = vmul.f32 1.442695, %v143_v55  ;;  %v321_v57 = vmul.f32 %v1280_v42, %v320_v8  ;;  %v388_v40 = vld [vmem:[#allocation5 + $0x78] sm:$0xff] }
  0xb1   :  { %v1290_v47 = vpop.eup %1289  ;;  %v776_v38 = vmul.f32 0.6931472, %v1288_v33  ;;  %v1989_v29 = vadd.f32 %v1028_v32, %v1015_v34  ;;  %v177_v28 = vmul.f32 1.442695, %v147_v46  ;;  %v343_v53 = vsub.f32 0.0, %v342_v21 }
  0xb2   :  { %v282_v25 = vmul.f32 0.6931472, %v1290_v47  ;;  %1301 = vpow2.f32 %v169_v9  ;;  %v981_v26 = vmul.f32 0.5, %v367_v5  ;;  %v644_v8 = vmul.f32 3.694528, %v1951_v50 }
  0xb3   :  { %v801_v52 = vadd.f32 %v776_v38, %v657_v41  ;;  %1303 = vpow2.f32 %v177_v28  ;;  %v344_v22 = vmul.f32 1.442695, %v343_v53  ;;  %v109_v11 = vmax.f32 %v1936_v58, 0.0 }
  0xb4   :  { %v1292_v62 = vpop.eup %1291  ;;  %v288_v14 = vsel %vm1984_vm10, %v285_v2, %v282_v25  ;;  %v997_v41 = vmul.f32 %v981_v26, %v367_v5  ;;  %v113_v55 = vmax.f32 %v1948_v18, 0.0  ;;  %v660_v46 = vsub.f32 0.08106147, %v644_v8  ;;  %v364_v8 = vld [vmem:[#allocation8 + $0x40] sm:$0xff] }
  0xb5   :  { %v1294_v20 = vpop.eup %1293  ;;  %v740_v10 = vmul.f32 0.5, %v1292_v62  ;;  %v2001_v7 = vadd.f32 %v801_v52, %v797_v59  ;;  %v336_v42 = vadd.f32 %v288_v14, %v112_v27  ;;  %v985_v27 = vmul.f32 0.5, %v371_v43 }
  0xb6   :  { %v1999_v1 = vpop.eup %1295  ;;  %v318_v39 = vmul.f32 0.6931472, %v1294_v20  ;;  %v111_v18 = vmax.f32 %v1970_v45, 0.0  ;;  %vm446_vm1 = vcmask 261120  }
  0xb7   :  { %v1298_v24 = vpop.eup %1297  ;;  %v756_v31 = vadd.f32 0.5, %v740_v10  ;;  %v253_v63 = vadd.f32 1.0, %v1999_v1  ;;  %v400_v0 = vmul.f32 %v367_v5, %v336_v42  ;;  %1305 = vlog2.f32 %v336_v42 }
  0xb8   :  { %v2006_v56 = vpop.eup %1299  ;;  %v744_v51 = vmul.f32 0.5, %v1298_v24  ;;  %v324_v35 = vsel %vm1991_vm11, %v321_v57, %v318_v39  ;;  %v256_v34 = vmul.f32 -0.5, %v1999_v1  ;;  %v259_v2 = vand.u32 2147483647, %v1999_v1 }
  0xb9   :  { %1307 = vlog2.f32 %v756_v31  ;;  %v340_v60 = vadd.f32 %v324_v35, %v116_v37  ;;  %v416_v32 = vadd.f32 %v400_v0, %v384_v54  ;;  %v289_v30 = vadd.f32 1.0, %v2006_v56 }
  0xba   :  { %v760_v19 = vadd.f32 0.5, %v744_v51  ;;  %1309 = vlog2.f32 %v253_v63  ;;  %v648_v37 = vmul.f32 3.694528, %v1958_v15  ;;  %v292_v21 = vmul.f32 -0.5, %v2006_v56 }
  0xbb   :  { %v404_v61 = vmul.f32 %v371_v43, %v340_v60  ;;  %1311 = vlog2.f32 %v340_v60  ;;  %v2015_v48 = vmul.f32 %v416_v32, %v416_v32  ;;  %v257_v59 = vadd.f32 1.0, %v256_v34 }
  0xbc   :  { %1313 = vlog2.f32 %v760_v19  ;;  %v2023_v47 = vpop.eup %1301  ;;  %v295_v58 = vand.u32 2147483647, %v2006_v56  ;;  %v664_v62 = vsub.f32 0.08106147, %v648_v37  ;;  %v1001_v57 = vmul.f32 %v985_v27, %v371_v43 }
  0xbd   :  { %v420_v33 = vadd.f32 %v404_v61, %v388_v40  ;;  %1315 = vlog2.f32 %v289_v30  ;;  %v678_v49 = vmul.f32 11009.538, %v2015_v48  ;;  %v2028_v15 = vpop.eup %1303  ;;  %v271_v4 = vadd.f32 1.0, %v2023_v47 }
  0xbe   :  { %1317 = vpow2.f32 %v344_v22  ;;  %v274_v9 = vmul.f32 -0.5, %v2023_v47  ;;  %vm2033_vm12 = vcmp.lt.f32.partialorder %v259_v2, 0.0004427343  ;;  %v293_v14 = vadd.f32 1.0, %v292_v21 }
  0xbf   :  { %v1178_v50 = vpack.c.bf16 %v420_v33, %v416_v32  ;;  %v2025_v38 = vmul.f32 %v420_v33, %v420_v33  ;;  %v694_v25 = vsub.f32 4.0, %v678_v49  ;;  %1319 = vlog2.f32 %v271_v4  ;;  %v2055_v4 = vld [vmem:[#allocation8 + $0x60] sm:$0xff] }
  0xc0   :  { %v307_v5 = vadd.f32 1.0, %v2028_v15  ;;  %v258_v24 = vmul.f32 %v1999_v1, %v257_v59  ;;  %vm2039_vm13 = vcmp.lt.f32.partialorder %v295_v58, 0.0004427343  ;;  %v275_v63 = vadd.f32 1.0, %v274_v9  ;;  %v381_v59 = vld [vmem:[#allocation5 + $0x40] sm:$0xff] }
  0xc1   :  { %1179 = vmatprep.subr.bf16.mxu1 %v1178_v50  ;;  %v682_v52 = vmul.f32 11009.538, %v2025_v38  ;;  %v1306_v20 = vpop.eup %1305  ;;  %v721_v10 = vmul.f32 1.442695, %v694_v25  ;;  %v310_v51 = vmul.f32 -0.5, %v2028_v15  ;;  %v294_v1 = vmul.f32 %v2006_v56, %v293_v14 }
  0xc2   :  { %v945_v42 = vmul.f32 0.6931472, %v1306_v20  ;;  %v277_v40 = vand.u32 2147483647, %v2023_v47  ;;  %v276_v58 = vmul.f32 %v2023_v47, %v275_v63  ;;  %v978_v20 = vmul.f32 0.5, %v364_v8 }
  0xc3   :  { %v1308_v53 = vpop.eup %1307  ;;  %v698_v39 = vsub.f32 4.0, %v682_v52  ;;  %1321 = vpow2.f32 %v721_v10  ;;  %v2102_v63 = vld [vmem:[%s2248_s6] sm:$0xf] }
  0xc4   :  { %v1310_v54 = vpop.eup %1309  ;;  %v782_v26 = vmul.f32 0.6931472, %v1308_v53  ;;  %v965_v0 = vsub.f32 -0.9189385, %v945_v42  ;;  %1323 = vlog2.f32 %v307_v5  ;;  %vm2065_vm14 = vcmp.lt.f32.partialorder %v277_v40, 0.0004427343 }
  0xc5   :  { %v1312_v35 = vpop.eup %1311  ;;  %v729_v43 = vmul.f32 1.442695, %v698_v39  ;;  %v255_v60 = vmul.f32 0.6931472, %v1310_v54  ;;  %v115_v39 = vmax.f32 %v1973_v16, 0.0 }
  0xc6   :  { %v1314_v27 = vpop.eup %1313  ;;  %v804_v22 = vadd.f32 %v782_v26, %v660_v46  ;;  %v953_v19 = vmul.f32 0.6931472, %v1312_v35  ;;  %v1013_v61 = vsub.f32 %v965_v0, %v997_v41  ;;  %v311_v46 = vadd.f32 1.0, %v310_v51 }
  0xc7   :  { %v1316_v32 = vpop.eup %1315  ;;  %v790_v30 = vmul.f32 0.6931472, %v1314_v27  ;;  %1325 = vpow2.f32 %v729_v43  ;;  %v261_v34 = vsel %vm2033_vm12, %v258_v24, %v255_v60  ;;  %v366_v27 = vld [vmem:[#allocation8 + $0x50] sm:$0xff] }
  0xc8   :  { %v2048_v37 = vpop.eup %1317  ;;  %v821_v33 = vadd.f32 %v1918_v23, %v804_v22  ;;  %v969_v2 = vsub.f32 -0.9189385, %v953_v19  ;;  %v291_v49 = vmul.f32 0.6931472, %v1316_v32  ;;  %v333_v21 = vadd.f32 %v261_v34, %v109_v11  ;;  %v2088_v32 = vld [vmem:[#allocation8 + $0x70] sm:$0xff] }
  0xc9   :  { %v808_v50 = vadd.f32 %v790_v30, %v664_v62  ;;  %v1046_v56 = vadd.f32 %v1859_v12, %v1013_v61  ;;  %v313_v11 = vand.u32 2147483647, %v2028_v15  ;;  %v346_v12 = vadd.f32 1.0, %v2048_v37  ;;  %v1320_v62 = vpop.eup %1319 }
  0xca   :  { %v1017_v25 = vsub.f32 %v969_v2, %v1001_v57  ;;  %v297_v41 = vsel %vm2039_vm13, %v294_v1, %v291_v49  ;;  %v397_v9 = vmul.f32 %v364_v8, %v333_v21  ;;  %1327 = vlog2.f32 %v333_v21  ;;  %v385_v57 = vld [vmem:[#allocation5 + $0x60] sm:$0xff] }
  0xcb   :  { %v2057_v52 = vadd.f32 %v821_v33, %v808_v50  ;;  %v337_v23 = vadd.f32 %v297_v41, %v113_v55  ;;  %v273_v55 = vmul.f32 0.6931472, %v1320_v62  ;;  %v312_v42 = vmul.f32 %v2028_v15, %v311_v46  ;;  %v383_v33 = vld [vmem:[#allocation5 + $0x50] sm:$0xff] }
  0xcc   :  { %v2063_v47 = vadd.f32 %v1046_v56, %v1017_v25  ;;  %v413_v28 = vadd.f32 %v397_v9, %v381_v59  ;;  %vm2077_vm15 = vcmp.lt.f32.partialorder %v313_v11, 0.0004427343  ;;  %v349_v35 = vmul.f32 -0.5, %v2048_v37  ;;  %v387_v50 = vld [vmem:[#allocation5 + $0x70] sm:$0xff] }
  0xcd   :  { %v401_v14 = vmul.f32 %v2055_v4, %v337_v23  ;;  %1329 = vlog2.f32 %v337_v23  ;;  %v1322_v5 = vpop.eup %1321  ;;  %v279_v26 = vsel %vm2065_vm14, %v276_v58, %v273_v55  ;;  %v982_v1 = vmul.f32 0.5, %v2055_v4 }
  0xce   :  { %v2071_v53 = vmul.f32 %v413_v28, %v413_v28  ;;  %1331 = vlog2.f32 %v346_v12  ;;  %v1324_v24 = vpop.eup %1323  ;;  %v742_v31 = vmul.f32 0.5, %v1322_v5  ;;  %v335_v60 = vadd.f32 %v279_v26, %v111_v18 }
  0xcf   :  { %v417_v54 = vadd.f32 %v401_v14, %v385_v57  ;;  %v309_v51 = vmul.f32 0.6931472, %v1324_v24  ;;  %v994_v61 = vmul.f32 %v978_v20, %v364_v8  ;;  %v350_v25 = vadd.f32 1.0, %v349_v35 }
  0xd0   :  { %v675_v45 = vmul.f32 11009.538, %v2071_v53  ;;  %v758_v16 = vadd.f32 0.5, %v742_v31  ;;  %v399_v56 = vmul.f32 %v366_v27, %v335_v60  ;;  %v352_v9 = vand.u32 2147483647, %v2048_v37 }
  0xd1   :  { %v1326_v43 = vpop.eup %1325  ;;  %v1172_v0 = vpack.c.bf16 %v417_v54, %v413_v28  ;;  %v2083_v15 = vmul.f32 %v417_v54, %v417_v54  ;;  %v315_v40 = vsel %vm2077_vm15, %v312_v42, %v309_v51  ;;  %v646_v57 = vmul.f32 3.694528, %v2015_v48 }
  0xd2   :  { %v746_v22 = vmul.f32 0.5, %v1326_v43  ;;  %v691_v19 = vsub.f32 4.0, %v675_v45  ;;  %1333 = vlog2.f32 %v758_v16  ;;  %v339_v34 = vadd.f32 %v315_v40, %v115_v39  ;;  %v421_v43 = vld [vmem:[%s2246_s4] sm:$0xf]  ;;  %s1535_s4 = smov [#allocation11]  }
  0xd3   :  { %1173 = vmatpush1.bf16.msra.mxu0 %v1172_v0  ;;  %v679_v30 = vmul.f32 11009.538, %v2083_v15  ;;  %1335 = vlog2.f32 %v335_v60  ;;  %v415_v41 = vadd.f32 %v399_v56, %v383_v33  ;;  %v998_v20 = vmul.f32 %v982_v1, %v2055_v4  ;;  %s1135_s6 = sshll.u32 %s1535_s4, 4  ;;  %s1136_s6 = int_to_ptr.vmem [resolvable:$true] %s1135_s6 }
  0xd4   :  { %v1328_v2 = vpop.eup %1327  ;;  %v762_v49 = vadd.f32 0.5, %v746_v22  ;;  %v715_v21 = vmul.f32 1.442695, %v691_v19  ;;  %v403_v46 = vmul.f32 %v2088_v32, %v339_v34  ;;  %v351_v18 = vmul.f32 %v2048_v37, %v350_v25  ;;  %s1451_s17 = scalar_lea.vmem %s1136_s6, 64  ;;  %p1456_p5 = scmp.lt.s32.totalorder %s1136_s6, %s1136_s6 }
  0xd5   :  { %v695_v59 = vsub.f32 4.0, %v679_v30  ;;  %v939_v58 = vmul.f32 0.6931472, %v1328_v2  ;;  %v341_v5 = vmax.f32 %v1978_v36, 0.0  ;;  %vm353_vm0 = vcmp.lt.f32.partialorder %v352_v9, 0.0004427343  ;;  %p1452_p4 = scmp.ne.s32.totalorder %s1136_s6, %s1451_s17  ;;  %p1457_p6 = scmp.lt.s32.totalorder %s1451_s17, %s1451_s17 }
  0xd6   :  { %1337 = vlog2.f32 %v762_v49  ;;  %v419_v12 = vadd.f32 %v403_v46, %v387_v50  ;;  %v650_v39 = vmul.f32 3.694528, %v2025_v38  ;;  %v980_v24 = vmul.f32 0.5, %v366_v27 }
  0xd7   :  { %v1330_v23 = vpop.eup %1329  ;;  %1339 = vpow2.f32 %v715_v21  ;;  %v723_v8 = vmul.f32 1.442695, %v695_v59  ;;  %v962_v11 = vsub.f32 -0.9189385, %v939_v58  ;;  %v662_v31 = vsub.f32 0.08106147, %v646_v57  ;;  %p1458_p7 = por %p1457_p6, %p1456_p5 }
  0xd8   :  { %v1332_v62 = vpop.eup %1331  ;;  %v947_v28 = vmul.f32 0.6931472, %v1330_v23  ;;  %1341 = vlog2.f32 %v339_v34  ;;  %v1180_v14 = vpack.c.bf16 %v419_v12, %v415_v41  ;;  %v984_v36 = vmul.f32 0.5, %v2088_v32 }
  0xd9   :  { %1343 = vpow2.f32 %v723_v8  ;;  %v1010_v10 = vsub.f32 %v962_v11, %v994_v61  ;;  %v348_v48 = vmul.f32 0.6931472, %v1332_v62  ;;  %v666_v38 = vsub.f32 0.08106147, %v650_v39  ;;  %p1459_p8 = pnand %p1458_p7, %p1452_p4 }
  0xda   :  { %v966_v55 = vsub.f32 -0.9189385, %v947_v28  ;;  %1181 = vmatpush1.bf16.msra.mxu1 %v1180_v14  ;;  %v2108_v22 = vmul.f32 %v415_v41, %v415_v41  ;;  %v2115_v50 = vmul.f32 %v419_v12, %v419_v12  ;;  %v1030_v12 = vrot.slane %v1989_v29, 4 }
  0xdb   :  { %v1019_v42 = vadd.f32 %v1908_v3, %v1010_v10  ;;  %v354_v26 = vsel %vm353_vm0, %v351_v18, %v348_v48  ;;  %v996_v3 = vmul.f32 %v980_v24, %v366_v27  ;;  %v1000_v27 = vmul.f32 %v984_v36, %v2088_v32 }
  0xdc   :  { %v1014_v54 = vsub.f32 %v966_v55, %v998_v20  ;;  %v1334_v4 = vpop.eup %1333  ;;  %v355_v51 = vadd.f32 %v354_v26, %v341_v5  ;;  %v677_v25 = vmul.f32 11009.538, %v2108_v22  ;;  %v681_v57 = vmul.f32 11009.538, %v2115_v50  ;;  %v424_v20 = vld [vmem:[#allocation2] sm:$0xff] }
  0xdd   :  { %v1336_v37 = vpop.eup %1335  ;;  %v786_v45 = vmul.f32 0.6931472, %v1334_v4  ;;  %v643_v5 = vmul.f32 3.694528, %v2071_v53  ;;  %1163 = vmatmul.mubr.msk.f32.vlgmr.msra.gmra.mrb[0].mxu0 %vm446_vm1, %v424_v20  ;;  %1164 = vmatmul.mubr.msk.f32.vlgmr.msra.gmra.mrb[0].mxu1 %vm446_vm1, %v424_v20  ;;  %v426_v4 = vlaneseq }
  0xde   :  { %v943_v35 = vmul.f32 0.6931472, %v1336_v37  ;;  %v1020_v16 = vadd.f32 %v1019_v42, %v1014_v54  ;;  %v422_v19 = vmul.f32 %v2102_v63, %v355_v51  ;;  %v693_v10 = vsub.f32 4.0, %v677_v25 }
  0xdf   :  { %v806_v60 = vadd.f32 %v786_v45, %v662_v31  ;;  %v697_v39 = vsub.f32 4.0, %v681_v57  ;;  %v647_v42 = vmul.f32 3.694528, %v2083_v15  ;;  %v659_v54 = vsub.f32 0.08106147, %v643_v5 }
  0xe0   :  { %v1338_v0 = vpop.eup %1337  ;;  %v964_v30 = vsub.f32 -0.9189385, %v943_v35  ;;  %v2113_v2 = vadd.f32 %v422_v19, %v421_v43  ;;  %v1021_v23 = vrot.slane %v1020_v16, 4  ;;  %v719_v24 = vmul.f32 1.442695, %v693_v10 }
  0xe1   :  { %v1340_v1 = vpop.eup %1339  ;;  %v794_v40 = vmul.f32 0.6931472, %v1338_v0  ;;  %v839_v34 = vadd.f32 %v1943_v6, %v806_v60  ;;  %v727_v37 = vmul.f32 1.442695, %v697_v39  ;;  %v1057_v45 = vmul.f32 0.5, %v2102_v63 }
  0xe2   :  { %v1342_v61 = vpop.eup %1341  ;;  %v739_v33 = vmul.f32 0.5, %v1340_v1  ;;  %v1012_v59 = vsub.f32 %v964_v30, %v996_v3  ;;  %v2120_v41 = vmul.f32 %v2113_v2, %v2113_v2  ;;  %v1022_v18 = vadd.f32 %v1021_v23, %v1020_v16 }
  0xe3   :  { %v1344_v49 = vpop.eup %1343  ;;  %v810_v21 = vadd.f32 %v794_v40, %v666_v38  ;;  %v951_v56 = vmul.f32 0.6931472, %v1342_v61  ;;  %v2135_v43 = vshrl.u32 %v426_v4, 7  ;;  %v823_v16 = vrot.slane %v2057_v52, 4 }
  0xe4   :  { %v743_v58 = vmul.f32 0.5, %v1344_v49  ;;  %v755_v46 = vadd.f32 0.5, %v739_v33  ;;  %v1037_v32 = vadd.f32 %v1938_v17, %v1012_v59  ;;  %v850_v11 = vmul.f32 11009.538, %v2120_v41 }
  0xe5   :  { %v2122_v6 = vadd.f32 %v839_v34, %v810_v21  ;;  %v968_v9 = vsub.f32 -0.9189385, %v951_v56  ;;  %v1031_v17 = vadd.f32 %v1030_v12, %v1989_v29  ;;  %v1023_v48 = vrot.slane %v1022_v18, 2 }
  0xe6   :  { %v759_v8 = vadd.f32 0.5, %v743_v58  ;;  %1345 = vlog2.f32 %v755_v46  ;;  %v851_v28 = vsub.f32 4.0, %v850_v11  ;;  %v663_v29 = vsub.f32 0.08106147, %v647_v42 }
  0xe7   :  { %v1016_v62 = vsub.f32 %v968_v9, %v1000_v27  ;;  %v1032_v31 = vrot.slane %v1031_v17, 2  ;;  %v598_v0 = vand.u32 127, %v426_v4  ;;  %v1058_v60 = vmul.f32 %v1057_v45, %v2102_v63 }
  0xe8   :  { %1347 = vlog2.f32 %v759_v8  ;;  %v852_v55 = vmul.f32 1.442695, %v851_v28  ;;  %v2142_v27 = vsub.s32 0, %v2135_v43  ;;  %v2145_v56 = vsub.s32 1, %v2135_v43 }
  0xe9   :  { %v2128_v14 = vadd.f32 %v1037_v32, %v1016_v62  ;;  %1349 = vlog2.f32 %v355_v51  ;;  %v1024_v51 = vadd.f32 %v1023_v48, %v1022_v18  ;;  %v1033_v38 = vadd.f32 %v1032_v31, %v1031_v17 }
  0xea   :  { %1351 = vpow2.f32 %v852_v55  ;;  %vm607_vm2 = vcmp.lt.s32.totalorder %v598_v0, 16  ;;  %v824_v59 = vadd.f32 %v823_v16, %v2057_v52  ;;  %v848_v17 = vmul.f32 3.694528, %v2120_v41 }
  0xeb   :  { %1353 = vpow2.f32 %v719_v24  ;;  %v1025_v40 = vrot.slane %v1024_v51, 1  ;;  %v1034_v34 = vrot.slane %v1033_v38, 1  ;;  %v1165_v8 = vsel %vm607_vm2, 1.0, %v1533_v13 }
  0xec   :  { %1355 = vpow2.f32 %v727_v37  ;;  %v825_v11 = vrot.slane %v824_v59, 2  ;;  %v849_v31 = vsub.f32 0.08106147, %v848_v17  ;;  %vm2190_vm3 = vcmp.lt.s32.totalorder %v426_v4, 512 }
  0xed   :  { %v1026_v46 = vadd.f32 %v1025_v40, %v1024_v51  ;;  %v1035_v25 = vadd.f32 %v1034_v34, %v1033_v38 }
  0xee   :  { %v826_v55 = vadd.f32 %v825_v11, %v824_v59  ;;  %v841_v59 = vrot.slane %v2122_v6, 4 }
  0xf0   :  { %v1346_v26 = vpop.eup %1345  ;;  %v827_v48 = vrot.slane %v826_v55, 1 }
  0xf1   :  { %v780_v36 = vmul.f32 0.6931472, %v1346_v26 }
  0xf2   :  { %v1348_v53 = vpop.eup %1347 }
  0xf3   :  { %v788_v35 = vmul.f32 0.6931472, %v1348_v53  ;;  %v803_v3 = vadd.f32 %v780_v36, %v659_v54  ;;  %v1350_v15 = vpop.eup %1349 }
  0xf4   :  { %v1055_v30 = vmul.f32 0.6931472, %v1350_v15  ;;  %v1352_v61 = vpop.eup %1351  ;;  %v645_v15 = vmul.f32 3.694528, %v2108_v22  ;;  %v1039_v22 = vrot.slane %v2128_v14, 4 }
  0xf5   :  { %v807_v19 = vadd.f32 %v788_v35, %v663_v29  ;;  %v812_v1 = vadd.f32 %v1961_v44, %v803_v3  ;;  %v854_v49 = vmul.f32 0.5, %v1352_v61  ;;  %v1354_v9 = vpop.eup %1353  ;;  %v828_v29 = vadd.f32 %v827_v48, %v826_v55 }
  0xf6   :  { %v1056_v21 = vsub.f32 -0.9189385, %v1055_v30  ;;  %v1356_v57 = vpop.eup %1355  ;;  %v741_v28 = vmul.f32 0.5, %v1354_v9  ;;  %v1040_v9 = vadd.f32 %v1039_v22, %v2128_v14  ;;  %v2177_v55 = vsub.s32 3, %v2135_v43 }
  0xf7   :  { %v813_v33 = vadd.f32 %v812_v1, %v807_v19  ;;  %v855_v58 = vadd.f32 0.5, %v854_v49  ;;  %v745_v39 = vmul.f32 0.5, %v1356_v57  ;;  %v661_v19 = vsub.f32 0.08106147, %v645_v15 }
  0xf8   :  { %v2148_v44 = vsub.f32 %v1056_v21, %v1058_v60  ;;  %v757_v42 = vadd.f32 0.5, %v741_v28  ;;  %v649_v60 = vmul.f32 3.694528, %v2115_v50 }
  0xf9   :  { %v814_v63 = vrot.slane %v813_v33, 4  ;;  %1357 = vlog2.f32 %v855_v58  ;;  %v761_v26 = vadd.f32 0.5, %v745_v39  ;;  %v1048_v58 = vrot.slane %v2063_v47, 4 }
  0xfa   :  { %v1064_v23 = vrot.slane %v2148_v44, %v2142_v27  ;;  %v1068_v12 = vrot.slane %v2148_v44, %v2145_v56  ;;  %1359 = vlog2.f32 %v757_v42  ;;  %v665_v30 = vsub.f32 0.08106147, %v649_v60 }
  0xfb   :  { %v815_v32 = vadd.f32 %v814_v63, %v813_v33  ;;  %1361 = vlog2.f32 %v761_v26 }
  0xfc   :  { %v1081_v52 = vadd.f32 %v1064_v23, %v1026_v46  ;;  %v1082_v20 = vadd.f32 %v1068_v12, %v1035_v25  ;;  %v842_v46 = vadd.f32 %v841_v59, %v2122_v6  ;;  %v1049_v25 = vadd.f32 %v1048_v58, %v2063_v47 }
  0xfd   :  { %v816_v62 = vrot.slane %v815_v32, 2 }
  0xfe   :  { %v2155_v10 = vmul.f32 %v1165_v8, %v1081_v52  ;;  %v2158_v5 = vmul.f32 0.0, %v1082_v20  ;;  %v1050_v12 = vrot.slane %v1049_v25, 2 }
  0xff   :  { %v817_v18 = vadd.f32 %v816_v62, %v815_v32  ;;  %v843_v32 = vrot.slane %v842_v46, 2 }
 0x100   :  { %v1093_v13 = vcombine.low %v2155_v10, %v2158_v5  ;;  %v1051_v20 = vadd.f32 %v1050_v12, %v1049_v25 }
 0x101   :  { %v818_v24 = vrot.slane %v817_v18, 1  ;;  %v844_v52 = vadd.f32 %v843_v32, %v842_v46 }
 0x102   :  { %v1052_v17 = vrot.slane %v1051_v20, 1 }
 0x103   :  { %v1358_v54 = vpop.eup %1357  ;;  %v819_v45 = vadd.f32 %v818_v24, %v817_v18  ;;  %v2174_v18 = vsub.s32 2, %v2135_v43  ;;  %v845_v47 = vrot.slane %v844_v52, 1 }
 0x104   :  { %v857_v37 = vmul.f32 0.6931472, %v1358_v54  ;;  %v1360_v16 = vpop.eup %1359  ;;  %v1053_v26 = vadd.f32 %v1052_v17, %v1051_v20 }
 0x105   :  { %v784_v1 = vmul.f32 0.6931472, %v1360_v16  ;;  %v1362_v40 = vpop.eup %1361  ;;  %v846_v24 = vadd.f32 %v845_v47, %v844_v52  ;;  %v1072_v54 = vrot.slane %v2148_v44, %v2174_v18 }
 0x106   :  { %v858_v36 = vadd.f32 %v857_v37, %v849_v31  ;;  %v792_v61 = vmul.f32 0.6931472, %v1362_v40  ;;  %v1076_v37 = vrot.slane %v2148_v44, %v2177_v55 }
 0x107   :  { %v805_v34 = vadd.f32 %v784_v1, %v661_v19 }
 0x108   :  { %v863_v41 = vrot.slane %v858_v36, %v2142_v27  ;;  %v867_v51 = vrot.slane %v858_v36, %v2145_v56  ;;  %v809_v33 = vadd.f32 %v792_v61, %v665_v30  ;;  %v871_v42 = vrot.slane %v858_v36, %v2174_v18 }
 0x109   :  { %v830_v49 = vadd.f32 %v2001_v7, %v805_v34  ;;  %v1041_v7 = vrot.slane %v1040_v9, 2  ;;  %v875_v48 = vrot.slane %v858_v36, %v2177_v55 }
 0x10a   :  { %v880_v53 = vadd.f32 %v863_v41, %v819_v45  ;;  %v881_v38 = vadd.f32 %v867_v51, %v828_v29 }
 0x10b   :  { %v831_v21 = vadd.f32 %v830_v49, %v809_v33  ;;  %v1042_v28 = vadd.f32 %v1041_v7, %v1040_v9  ;;  %v883_v41 = vadd.f32 %v875_v48, %v846_v24 }
 0x10c   :  { %v884_v35 = vmul.f32 %v1165_v8, %v880_v53  ;;  %v885_v3 = vmul.f32 0.0, %v881_v38  ;;  %v1534_v8 = vmov 1966171168   ;;  %v1084_v53 = vadd.f32 %v1076_v37, %v1053_v26 }
 0x10d   :  { %v832_v63 = vrot.slane %v831_v21, 4  ;;  %v895_v11 = vunpack.c.l.s4 %v1534_v8  ;;  %v1043_v14 = vrot.slane %v1042_v28, 1 }
 0x10e   :  { %v892_v0 = vcombine.low %v884_v35, %v885_v3  ;;  %v887_v35 = vmul.f32 0.0, %v883_v41  ;;  %v1088_v15 = vmul.f32 0.0, %v1084_v53 }
 0x10f   :  { %v833_v50 = vadd.f32 %v832_v63, %v831_v21  ;;  %v896_v57 = vunpack.c.0.s8 %v895_v11  ;;  %v1044_v31 = vadd.f32 %v1043_v14, %v1042_v28 }
 0x111   :  { %v834_v23 = vrot.slane %v833_v50, 2  ;;  %v899_v45 = vsub.s32 %v896_v57, %v2135_v43  ;;  %v1083_v51 = vadd.f32 %v1072_v54, %v1044_v31 }
 0x113   :  { %v835_v62 = vadd.f32 %v834_v23, %v833_v50  ;;  %v1087_v3 = vmul.f32 0.0, %v1083_v51  ;;  %v900_v16 = vrot.slane %v892_v0, %v899_v45  ;;  %v1101_v60 = vrot.slane %v1093_v13, %v899_v45 }
 0x115   :  { %v836_v6 = vrot.slane %v835_v62, 1  ;;  %v1094_v19 = vcombine.low %v1087_v3, %v1088_v15 }
 0x117   :  { %v837_v39 = vadd.f32 %v836_v6, %v835_v62  ;;  %v1108_v40 = vrot.slane %v1094_v19, %v899_v45 }
 0x119   :  { %v882_v29 = vadd.f32 %v871_v42, %v837_v39  ;;  %v1109_v30 = vcombine.low %v1101_v60, %v1108_v40 }
 0x11b   :  { %v886_v38 = vmul.f32 0.0, %v882_v29  ;;  %v1116_v34 = vrot.slane %v1109_v30, %v899_v45 }
 0x11d   :  { %v893_v36 = vcombine.low %v886_v38, %v887_v35 }
 0x11f   :  { %v907_v1 = vrot.slane %v893_v36, %v899_v45 }
 0x121   :  { %v908_v44 = vcombine.low %v900_v16, %v907_v1 }
 0x123   :  { %v915_v43 = vrot.slane %v908_v44, %v899_v45 }
 0x125   :  { %921 = vst.msk [vmem:[#allocation11] sm:$0xf] %vm2190_vm3, %v915_v43 }
 0x126   :  { %1462 = shalt.err (!%p1459_p8)
}
 0x127   :  { %s1463_s22 = scalar_lea.hbm %s2250_s8, 64 }
 0x128   :  { %p1464_p9 = scmp.ne.s32.totalorder %s2250_s8, %s1463_s22  ;;  %p1467_p10 = scmp.lt.u32.totalorder %s1463_s22, %s2250_s8 }
 0x12a   :  { %p1469_p11 = pnand %p1467_p10, %p1464_p9 }
 0x12c   :  { %1472 = shalt.err (!%p1469_p11)
}
 0x12d   :  { %1138 = dma.vmem_to_hbm [thread:$0]  %s1136_s6, 64, %s2250_s8, [#allocation12]   ;;  %1118 = vst.msk [vmem:[#allocation13] sm:$0xf] %vm2190_vm3, %v1116_v34 }
 0x12e   :  { %s1536_s29 = smov [#allocation13]  }
 0x12f   :  { %s1145_s30 = sshll.u32 %s1536_s29, 4  ;;  %s1146_s30 = int_to_ptr.vmem [resolvable:$true] %s1145_s30 }
 0x130   :  { %s1473_s11 = scalar_lea.vmem %s1146_s30, 64  ;;  %p1478_p13 = scmp.lt.s32.totalorder %s1146_s30, %s1146_s30 }
 0x131   :  { %p1474_p12 = scmp.ne.s32.totalorder %s1146_s30, %s1473_s11  ;;  %p1479_p0 = scmp.lt.s32.totalorder %s1473_s11, %s1473_s11 }
 0x133   :  { %p1480_p1 = por %p1479_p0, %p1478_p13 }
 0x135   :  { %p1481_p2 = pnand %p1480_p1, %p1474_p12 }
 0x137   :  { %1484 = shalt.err (!%p1481_p2)
}
 0x138   :  { %s1485_s1 = scalar_lea.hbm %s2251_s9, 64 }
 0x139   :  { %p1486_p3 = scmp.ne.s32.totalorder %s2251_s9, %s1485_s1  ;;  %p1489_p4 = scmp.lt.u32.totalorder %s1485_s1, %s2251_s9 }
 0x13b   :  { %p1491_p5 = pnand %p1489_p4, %p1486_p3 }
 0x13d   :  { %1494 = shalt.err (!%p1491_p5)
}
 0x13e   :  { %1148 = dma.vmem_to_hbm [thread:$0]  %s1146_s30, 64, %s2251_s9, [#allocation12]   ;;  %v429_v4 = vrot.slane %v2113_v2, %v2142_v27  ;;  %v437_v10 = vrot.slane %v2113_v2, %v2174_v18  ;;  %v433_v5 = vrot.slane %v2113_v2, %v2145_v56  ;;  %v441_v13 = vrot.slane %v2113_v2, %v2177_v55 }
 0x13f   :  { %s1537_s19 = smov [#allocation10]  }
 0x140   :  { %s1125_s5 = sshll.u32 %s1537_s19, 4  ;;  %s1126_s5 = int_to_ptr.vmem [resolvable:$true] %s1125_s5 }
 0x141   :  { %s1495_s9 = scalar_lea.vmem %s1126_s5, 512  ;;  %p1500_p7 = scmp.lt.s32.totalorder %s1126_s5, %s1126_s5 }
 0x142   :  { %p1496_p6 = scmp.ne.s32.totalorder %s1126_s5, %s1495_s9  ;;  %p1501_p8 = scmp.lt.s32.totalorder %s1495_s9, %s1495_s9 }
 0x144   :  { %p1502_p9 = por %p1501_p8, %p1500_p7 }
 0x146   :  { %p1503_p10 = pnand %p1502_p9, %p1496_p6 }
 0x1b0   :  { %v516_v0 = vpop.f32.mrb[0].mxu0  ;;  %v587_v33 = vpop.f32.mrb[0].mxu1 }
 0x1b1   :  { %v517_v49 = vadd.f32 %v516_v0, %v429_v4  ;;  %v588_v21 = vadd.f32 %v587_v33, %v437_v10  ;;  %v518_v59 = vpop.f32.mrb[1].mxu0  ;;  %v589_v63 = vpop.f32.mrb[1].mxu1 }
 0x1b2   :  { %v519_v58 = vadd.f32 %v518_v59, %v433_v5  ;;  %v590_v22 = vadd.f32 %v589_v63, %v441_v13 }
 0x1b3   :  { %592 = vst [vmem:[#allocation10] sm:$0xff] %v517_v49  ;;  %594 = vst [vmem:[#allocation10 + $0x10] sm:$0xff] %v588_v21 }
 0x1b4   :  { %593 = vst [vmem:[#allocation10 + $0x8] sm:$0xff] %v519_v58  ;;  %595 = vst [vmem:[#allocation10 + $0x18] sm:$0xff] %v590_v22 }
 0x1b5   :  { %1506 = shalt.err (!%p1503_p10)
}
 0x1b6   :  { %s1507_s16 = scalar_lea.hbm %s2249_s7, 512 }
 0x1b7   :  { %p1508_p11 = scmp.ne.s32.totalorder %s2249_s7, %s1507_s16  ;;  %p1511_p12 = scmp.lt.u32.totalorder %s1507_s16, %s2249_s7 }
 0x1b9   :  { %p1513_p13 = pnand %p1511_p12, %p1508_p11 }
 0x1bb   :  { %1516 = shalt.err (!%p1513_p13)
}
 0x1bc   :  { %1128 = dma.vmem_to_hbm [thread:$0]  %s1126_s5, 512, %s2249_s7, [#allocation4]  }
 0x1bd   :  { %1523 = dma.done.wait [#allocation4], 512  }
 0x1be   :  { %1524 = vsyncadd [#allocation4], 4294966784 }
 0x1bf   :  { %1525 = dma.done.wait [#allocation12], 128  }
 0x1c0   :  { %1526 = vsyncadd [#allocation12], 4294967168 }
 0x1c1   :  { %1158 = vsyncpa [#allocation3], 1 }
 0x1c2   :  { %1159 = vsyncpa [#allocation6], 1 }
 0x1c3   :  { %1160 = vsyncpa [#allocation9], 1 }
 0x1c4   :  { %1161 = vsyncpa [#allocation4], 1 }
 0x1c5   :  { %1162 = vsyncpa [#allocation12], 1 }

</bundles_post_ra>
